<compile_context>
chip_gen: v6e
topology: v6e:2x2x1
jax: 0.10.0
libtpu: 0.0.40
codegen_flags: <defaults>
</compile_context>

<pallas_src>
import jax
import jax.numpy as jnp
from jax.experimental import pallas as pl
from jax.experimental.pallas import tpu as pltpu

NEG_SLOPE = 0.2       # GATConv default LeakyReLU slope
MASK_NEG = -1e30      # additive mask for non-edges (self-loops guarantee >=1
                      # valid entry per target row, so every softmax row is sane)
C2_PAD = 128          # pad logit lane dim to a full vreg lane width -> unmasked vst


def _make_fused_gat_kernel(heads1, c1):
    hc1 = heads1 * c1

    def kernel(x_ref, adj_bias_ref, w1e_ref, b1_ref, w2e_ref, b2p_ref, o_ref):
        n = adj_bias_ref.shape[0]
        x = x_ref[...]                                           # [N, F_in] f32
        # additive mask precomputed in wrapper (bf16 DMA), upcast once, reused
        adj_bias = adj_bias_ref[...].astype(jnp.float32)         # [N, N]
        # constant ones column: softmax denominators become MXU matmuls
        ones_col = jnp.ones((n, 1), jnp.bfloat16)

        # ---------- layer 1: GATConv(F_in -> c1, heads, concat=True) ----------
        # folded projection: [xw_all | alpha_src | alpha_dst] in ONE matmul
        proj1 = jnp.dot(x, w1e_ref[...],
                        preferred_element_type=jnp.float32)      # [N, HC1+2H]
        xw_all = proj1[:, :hc1]                                  # [N, H*C1]
        alpha_src_all = proj1[:, hc1:hc1 + heads1]               # [N, H]
        alpha_dst_all = proj1[:, hc1 + heads1:hc1 + 2 * heads1]  # [N, H]
        alpha_src_t = jnp.transpose(alpha_src_all)               # [H, N] (1 transpose)
        xw_all_bf = xw_all.astype(jnp.bfloat16)                  # bf16 MXU operand

        head_outs = []
        for h in range(heads1):                                  # static unroll, H small
            a_dst = alpha_dst_all[:, h:h + 1]                    # [N, 1]
            a_src = alpha_src_t[h:h + 1, :]                      # [1, N]
            # e[i, j] = LeakyReLU(alpha_dst[i] + alpha_src[j]) masked to edges
            e = a_dst + a_src                                    # [N, N]
            e = jnp.where(e > 0, e, NEG_SLOPE * e)
            e = e + adj_bias
            m = jnp.max(e, axis=1, keepdims=True)                # row-max (XLU)
            p = jnp.exp(e - m).astype(jnp.bfloat16)              # unnormalized attn
            # aggregation + denominator both on the MXU; normalize AFTER aggregation
            num = jnp.dot(p, xw_all_bf[:, h * c1:(h + 1) * c1],
                          preferred_element_type=jnp.float32)    # [N, C1]
            den = jnp.dot(p, ones_col,
                          preferred_element_type=jnp.float32)    # [N, 1] (>= 1)
            head_outs.append(num * pl.reciprocal(den, approx=True))

        # concat head outputs as values (no masked scratch stores), bias, ELU
        hid = jnp.concatenate(head_outs, axis=1) + b1_ref[...]   # [N, H*C1]
        hid = jnp.where(hid > 0, hid, jnp.exp(jnp.minimum(hid, 0.0)) - 1.0)

        # ------ layer 2: GATConv(H*C1 -> C2, heads=1, concat=False) ------
        # folded projection: [xw2(padded to C2_PAD) | a_src2 | a_dst2]
        proj2 = jnp.dot(hid, w2e_ref[...],
                        preferred_element_type=jnp.float32)      # [N, C2_PAD + 2]
        xw2 = proj2[:, :C2_PAD]
        a_src2 = proj2[:, C2_PAD:C2_PAD + 1]                     # [N, 1]
        a_dst2 = proj2[:, C2_PAD + 1:C2_PAD + 2]                 # [N, 1]
        e2 = a_dst2 + jnp.transpose(a_src2)                      # [N, N]
        e2 = jnp.where(e2 > 0, e2, NEG_SLOPE * e2)
        e2 = e2 + adj_bias
        m2 = jnp.max(e2, axis=1, keepdims=True)
        p2 = jnp.exp(e2 - m2).astype(jnp.bfloat16)
        num2 = jnp.dot(p2, xw2.astype(jnp.bfloat16),
                       preferred_element_type=jnp.float32)       # [N, C2_PAD]
        den2 = jnp.dot(p2, ones_col, preferred_element_type=jnp.float32)
        # padded logit lanes carry MASK_NEG via the padded bias -> exp() == 0 below
        out = num2 * pl.reciprocal(den2, approx=True) + b2p_ref[...]

        # log_softmax over the (padded) class lanes; pads contribute exactly 0
        mo = jnp.max(out, axis=1, keepdims=True)
        z = out - mo
        out = z - jnp.log(jnp.sum(jnp.exp(z), axis=1, keepdims=True))
        o_ref[...] = out.astype(o_ref.dtype)                     # lane-dense store

    return kernel


def _block_diag_att(a):
    """[H, C] per-head attention vector -> block-diagonal [H*C, H] matrix so that
    (xw_all @ result)[:, h] == sum_c xw_all[:, h*C + c] * a[h, c]."""
    H, C = a.shape
    eye = jnp.eye(H, dtype=a.dtype)                 # [H, H]
    blk = a[:, :, None] * eye[:, None, :]           # [H, C, H]
    return blk.reshape(H * C, H)


def gat_net_forward(x, adj, params, *, heads, hid, num_classes):
    n = x.shape[0]
    hc1 = heads * hid
    assert num_classes <= C2_PAD

    # additive edge mask computed once, shipped as bf16 (-1e30 is representable)
    adj_bias = jnp.where(adj > 0.5, jnp.float32(0.0),
                         jnp.float32(MASK_NEG)).astype(jnp.bfloat16)

    # ---- fold attention-vector projections into the feature projections ----
    w1 = params["W1"]                                            # [F, H*C1]
    as1_blk = _block_diag_att(params["as1"])                     # [H*C1, H]
    ad1_blk = _block_diag_att(params["ad1"])                     # [H*C1, H]
    w1_eff = jnp.concatenate([w1, w1 @ as1_blk, w1 @ ad1_blk], axis=1)  # [F, HC1+2H]

    w2 = params["W2"]                                            # [H*C1, C2]
    w2_pad = jnp.zeros((hc1, C2_PAD), jnp.float32).at[:, :num_classes].set(w2)
    a_src2_col = w2 @ jnp.transpose(params["as2"])               # [H*C1, 1]
    a_dst2_col = w2 @ jnp.transpose(params["ad2"])               # [H*C1, 1]
    w2_eff = jnp.concatenate([w2_pad, a_src2_col, a_dst2_col], axis=1)  # [HC1, C2P+2]

    # padded bias: real classes keep b2, pad lanes get MASK_NEG (killed by softmax)
    b2p = jnp.full((1, C2_PAD), MASK_NEG, jnp.float32).at[:, :num_classes].set(
        params["b2"])

    kernel = _make_fused_gat_kernel(heads, hid)
    vmem = pl.BlockSpec(memory_space=pltpu.MemorySpace.VMEM)

    out_pad = pl.pallas_call(
        kernel,
        out_shape=jax.ShapeDtypeStruct((n, C2_PAD), jnp.float32),
        in_specs=[vmem] * 6,
        out_specs=vmem,
    )(x, adj_bias, w1_eff, params["b1"], w2_eff, b2p)
    return out_pad[:, :num_classes]


if __name__ == "__main__":
    N = 32            # number of graph nodes
    F_IN = 16         # dataset.num_features (synthetic)
    HID = 8           # GATConv hidden channels
    HEADS = 8
    NUM_CLASSES = 4   # dataset.num_classes (synthetic)

    key = jax.random.PRNGKey(0)
    keys = jax.random.split(key, 10)

    # synthetic node features (NormalizeFeatures-style rows are fine as plain floats)
    x = jax.random.normal(keys[0], (N, F_IN), jnp.float32)

    # synthetic directed graph + self-loops (GATConv add_self_loops=True)
    adj = (jax.random.uniform(keys[1], (N, N)) < 0.15).astype(jnp.float32)
    adj = jnp.maximum(adj, jnp.eye(N, dtype=jnp.float32))

    def glorot(k, shape):
        fan_in, fan_out = shape[0], shape[-1]
        lim = (6.0 / (fan_in + fan_out)) ** 0.5
        return jax.random.uniform(k, shape, jnp.float32, -lim, lim)

    params = dict(
        W1=glorot(keys[2], (F_IN, HEADS * HID)),          # conv1 lin weight
        as1=glorot(keys[3], (HEADS, HID)),                # conv1 att_src
        ad1=glorot(keys[4], (HEADS, HID)),                # conv1 att_dst
        b1=jnp.zeros((1, HEADS * HID), jnp.float32),      # conv1 bias
        W2=glorot(keys[5], (HEADS * HID, NUM_CLASSES)),   # conv2 lin weight
        as2=glorot(keys[6], (1, NUM_CLASSES)),            # conv2 att_src
        ad2=glorot(keys[7], (1, NUM_CLASSES)),            # conv2 att_dst
        b2=jnp.zeros((1, NUM_CLASSES), jnp.float32),      # conv2 bias
    )

    @jax.jit
    def net_forward(x, adj, params):
        # F.dropout(p=0.6) and the in-layer attention dropout are identity in eval mode.
        return gat_net_forward(x, adj, params,
                               heads=HEADS, hid=HID, num_classes=NUM_CLASSES)

    out = net_forward(x, adj, params)
    jax.block_until_ready(out)
    assert out.shape == (N, NUM_CLASSES)
    assert bool(jnp.all(jnp.isfinite(out)))
    # log_softmax rows should sum to ~1 in prob space
    assert bool(jnp.all(jnp.abs(jnp.sum(jnp.exp(out), axis=1) - 1.0) < 1e-3))
    print("KERNEL_OK")
</pallas_src>

<mosaic_0001>
module attributes {stable_mosaic.version = 11 : i64} {
  func.func @kernel(%arg0: memref<32x16xf32, #tpu.memory_space<vmem>>, %arg1: memref<32x32xbf16, #tpu.memory_space<vmem>>, %arg2: memref<16x80xf32, #tpu.memory_space<vmem>>, %arg3: memref<1x64xf32, #tpu.memory_space<vmem>>, %arg4: memref<64x130xf32, #tpu.memory_space<vmem>>, %arg5: memref<1x128xf32, #tpu.memory_space<vmem>>, %arg6: memref<32x128xf32, #tpu.memory_space<vmem>>) attributes {dimension_semantics = [], scalar_prefetch = 0 : i64, scratch_operands = 0 : i64, tpu.core_type = #tpu.core_type<tc>} {
    %c0 = arith.constant 0 : index
    %c0_0 = arith.constant 0 : index
    %0 = vector.load %arg0[%c0, %c0_0] : memref<32x16xf32, #tpu.memory_space<vmem>>, vector<32x16xf32>
    %c0_1 = arith.constant 0 : index
    %c0_2 = arith.constant 0 : index
    %1 = vector.load %arg1[%c0_1, %c0_2] : memref<32x32xbf16, #tpu.memory_space<vmem>>, vector<32x32xbf16>
    %2 = arith.extf %1 : vector<32x32xbf16> to vector<32x32xf32>
    %cst = arith.constant 1.000000e+00 : bf16
    %3 = vector.broadcast %cst : bf16 to vector<32x1xbf16>
    %c0_3 = arith.constant 0 : index
    %c0_4 = arith.constant 0 : index
    %4 = vector.load %arg2[%c0_3, %c0_4] : memref<16x80xf32, #tpu.memory_space<vmem>>, vector<16x80xf32>
    %cst_5 = arith.constant dense<0.000000e+00> : vector<32x80xf32>
    %5 = tpu.matmul %0, %4, %cst_5 {dimension_numbers = #tpu.dot_dimension_numbers<[1], [0], [0], [1], [0, 0, 1, 1], [], []>} : vector<32x16xf32>, vector<16x80xf32>, vector<32x80xf32> -> vector<32x80xf32>
    %6 = vector.extract_strided_slice %5 {offsets = [0, 0], sizes = [32, 64], strides = [1, 1]} : vector<32x80xf32> to vector<32x64xf32>
    %7 = vector.extract_strided_slice %5 {offsets = [0, 64], sizes = [32, 8], strides = [1, 1]} : vector<32x80xf32> to vector<32x8xf32>
    %8 = vector.extract_strided_slice %5 {offsets = [0, 72], sizes = [32, 8], strides = [1, 1]} : vector<32x80xf32> to vector<32x8xf32>
    %9 = tpu.transpose %7, [1, 0] : vector<32x8xf32> -> vector<8x32xf32>
    %10 = arith.truncf %6 : vector<32x64xf32> to vector<32x64xbf16>
    %11 = vector.extract_strided_slice %8 {offsets = [0, 0], sizes = [32, 1], strides = [1, 1]} : vector<32x8xf32> to vector<32x1xf32>
    %12 = vector.extract_strided_slice %9 {offsets = [0, 0], sizes = [1, 32], strides = [1, 1]} : vector<8x32xf32> to vector<1x32xf32>
    %13 = vector.broadcast %11 : vector<32x1xf32> to vector<32x32xf32>
    %14 = vector.broadcast %12 : vector<1x32xf32> to vector<32x32xf32>
    %15 = arith.addf %13, %14 : vector<32x32xf32>
    %cst_6 = arith.constant 0.000000e+00 : f32
    %16 = vector.broadcast %cst_6 : f32 to vector<32x32xf32>
    %17 = arith.cmpf ogt, %15, %16 : vector<32x32xf32>
    %cst_7 = arith.constant 2.000000e-01 : f32
    %18 = vector.broadcast %cst_7 : f32 to vector<32x32xf32>
    %19 = arith.mulf %18, %15 : vector<32x32xf32>
    %20 = arith.select %17, %15, %19 : vector<32x32xi1>, vector<32x32xf32>
    %21 = arith.addf %20, %2 : vector<32x32xf32>
    %cst_8 = arith.constant dense<0xFF800000> : vector<32xf32>
    %22 = vector.multi_reduction <maximumf>, %21, %cst_8 [1] : vector<32x32xf32> to vector<32xf32>
    %23 = vector.shape_cast %22 : vector<32xf32> to vector<32x1xf32>
    %24 = vector.broadcast %23 : vector<32x1xf32> to vector<32x32xf32>
    %25 = arith.subf %21, %24 : vector<32x32xf32>
    %26 = math.exp %25 : vector<32x32xf32>
    %27 = arith.truncf %26 : vector<32x32xf32> to vector<32x32xbf16>
    %28 = vector.extract_strided_slice %10 {offsets = [0, 0], sizes = [32, 8], strides = [1, 1]} : vector<32x64xbf16> to vector<32x8xbf16>
    %cst_9 = arith.constant dense<0.000000e+00> : vector<32x8xf32>
    %29 = tpu.matmul %27, %28, %cst_9 {dimension_numbers = #tpu.dot_dimension_numbers<[1], [0], [0], [1], [0, 0, 1, 1], [], []>} : vector<32x32xbf16>, vector<32x8xbf16>, vector<32x8xf32> -> vector<32x8xf32>
    %cst_10 = arith.constant dense<0.000000e+00> : vector<32x1xf32>
    %30 = tpu.matmul %27, %3, %cst_10 {dimension_numbers = #tpu.dot_dimension_numbers<[1], [0], [0], [1], [0, 0, 1, 1], [], []>} : vector<32x32xbf16>, vector<32x1xbf16>, vector<32x1xf32> -> vector<32x1xf32>
    %31 = tpu.reciprocal %30 {approx = true} : vector<32x1xf32> -> vector<32x1xf32>
    %32 = vector.broadcast %31 : vector<32x1xf32> to vector<32x8xf32>
    %33 = arith.mulf %29, %32 : vector<32x8xf32>
    %34 = vector.extract_strided_slice %8 {offsets = [0, 1], sizes = [32, 1], strides = [1, 1]} : vector<32x8xf32> to vector<32x1xf32>
    %35 = vector.extract_strided_slice %9 {offsets = [1, 0], sizes = [1, 32], strides = [1, 1]} : vector<8x32xf32> to vector<1x32xf32>
    %36 = vector.broadcast %34 : vector<32x1xf32> to vector<32x32xf32>
    %37 = vector.broadcast %35 : vector<1x32xf32> to vector<32x32xf32>
    %38 = arith.addf %36, %37 : vector<32x32xf32>
    %cst_11 = arith.constant 0.000000e+00 : f32
    %39 = vector.broadcast %cst_11 : f32 to vector<32x32xf32>
    %40 = arith.cmpf ogt, %38, %39 : vector<32x32xf32>
    %cst_12 = arith.constant 2.000000e-01 : f32
    %41 = vector.broadcast %cst_12 : f32 to vector<32x32xf32>
    %42 = arith.mulf %41, %38 : vector<32x32xf32>
    %43 = arith.select %40, %38, %42 : vector<32x32xi1>, vector<32x32xf32>
    %44 = arith.addf %43, %2 : vector<32x32xf32>
    %cst_13 = arith.constant dense<0xFF800000> : vector<32xf32>
    %45 = vector.multi_reduction <maximumf>, %44, %cst_13 [1] : vector<32x32xf32> to vector<32xf32>
    %46 = vector.shape_cast %45 : vector<32xf32> to vector<32x1xf32>
    %47 = vector.broadcast %46 : vector<32x1xf32> to vector<32x32xf32>
    %48 = arith.subf %44, %47 : vector<32x32xf32>
    %49 = math.exp %48 : vector<32x32xf32>
    %50 = arith.truncf %49 : vector<32x32xf32> to vector<32x32xbf16>
    %51 = vector.extract_strided_slice %10 {offsets = [0, 8], sizes = [32, 8], strides = [1, 1]} : vector<32x64xbf16> to vector<32x8xbf16>
    %cst_14 = arith.constant dense<0.000000e+00> : vector<32x8xf32>
    %52 = tpu.matmul %50, %51, %cst_14 {dimension_numbers = #tpu.dot_dimension_numbers<[1], [0], [0], [1], [0, 0, 1, 1], [], []>} : vector<32x32xbf16>, vector<32x8xbf16>, vector<32x8xf32> -> vector<32x8xf32>
    %cst_15 = arith.constant dense<0.000000e+00> : vector<32x1xf32>
    %53 = tpu.matmul %50, %3, %cst_15 {dimension_numbers = #tpu.dot_dimension_numbers<[1], [0], [0], [1], [0, 0, 1, 1], [], []>} : vector<32x32xbf16>, vector<32x1xbf16>, vector<32x1xf32> -> vector<32x1xf32>
    %54 = tpu.reciprocal %53 {approx = true} : vector<32x1xf32> -> vector<32x1xf32>
    %55 = vector.broadcast %54 : vector<32x1xf32> to vector<32x8xf32>
    %56 = arith.mulf %52, %55 : vector<32x8xf32>
    %57 = vector.extract_strided_slice %8 {offsets = [0, 2], sizes = [32, 1], strides = [1, 1]} : vector<32x8xf32> to vector<32x1xf32>
    %58 = vector.extract_strided_slice %9 {offsets = [2, 0], sizes = [1, 32], strides = [1, 1]} : vector<8x32xf32> to vector<1x32xf32>
    %59 = vector.broadcast %57 : vector<32x1xf32> to vector<32x32xf32>
    %60 = vector.broadcast %58 : vector<1x32xf32> to vector<32x32xf32>
    %61 = arith.addf %59, %60 : vector<32x32xf32>
    %cst_16 = arith.constant 0.000000e+00 : f32
    %62 = vector.broadcast %cst_16 : f32 to vector<32x32xf32>
    %63 = arith.cmpf ogt, %61, %62 : vector<32x32xf32>
    %cst_17 = arith.constant 2.000000e-01 : f32
    %64 = vector.broadcast %cst_17 : f32 to vector<32x32xf32>
    %65 = arith.mulf %64, %61 : vector<32x32xf32>
    %66 = arith.select %63, %61, %65 : vector<32x32xi1>, vector<32x32xf32>
    %67 = arith.addf %66, %2 : vector<32x32xf32>
    %cst_18 = arith.constant dense<0xFF800000> : vector<32xf32>
    %68 = vector.multi_reduction <maximumf>, %67, %cst_18 [1] : vector<32x32xf32> to vector<32xf32>
    %69 = vector.shape_cast %68 : vector<32xf32> to vector<32x1xf32>
    %70 = vector.broadcast %69 : vector<32x1xf32> to vector<32x32xf32>
    %71 = arith.subf %67, %70 : vector<32x32xf32>
    %72 = math.exp %71 : vector<32x32xf32>
    %73 = arith.truncf %72 : vector<32x32xf32> to vector<32x32xbf16>
    %74 = vector.extract_strided_slice %10 {offsets = [0, 16], sizes = [32, 8], strides = [1, 1]} : vector<32x64xbf16> to vector<32x8xbf16>
    %cst_19 = arith.constant dense<0.000000e+00> : vector<32x8xf32>
    %75 = tpu.matmul %73, %74, %cst_19 {dimension_numbers = #tpu.dot_dimension_numbers<[1], [0], [0], [1], [0, 0, 1, 1], [], []>} : vector<32x32xbf16>, vector<32x8xbf16>, vector<32x8xf32> -> vector<32x8xf32>
    %cst_20 = arith.constant dense<0.000000e+00> : vector<32x1xf32>
    %76 = tpu.matmul %73, %3, %cst_20 {dimension_numbers = #tpu.dot_dimension_numbers<[1], [0], [0], [1], [0, 0, 1, 1], [], []>} : vector<32x32xbf16>, vector<32x1xbf16>, vector<32x1xf32> -> vector<32x1xf32>
    %77 = tpu.reciprocal %76 {approx = true} : vector<32x1xf32> -> vector<32x1xf32>
    %78 = vector.broadcast %77 : vector<32x1xf32> to vector<32x8xf32>
    %79 = arith.mulf %75, %78 : vector<32x8xf32>
    %80 = vector.extract_strided_slice %8 {offsets = [0, 3], sizes = [32, 1], strides = [1, 1]} : vector<32x8xf32> to vector<32x1xf32>
    %81 = vector.extract_strided_slice %9 {offsets = [3, 0], sizes = [1, 32], strides = [1, 1]} : vector<8x32xf32> to vector<1x32xf32>
    %82 = vector.broadcast %80 : vector<32x1xf32> to vector<32x32xf32>
    %83 = vector.broadcast %81 : vector<1x32xf32> to vector<32x32xf32>
    %84 = arith.addf %82, %83 : vector<32x32xf32>
    %cst_21 = arith.constant 0.000000e+00 : f32
    %85 = vector.broadcast %cst_21 : f32 to vector<32x32xf32>
    %86 = arith.cmpf ogt, %84, %85 : vector<32x32xf32>
    %cst_22 = arith.constant 2.000000e-01 : f32
    %87 = vector.broadcast %cst_22 : f32 to vector<32x32xf32>
    %88 = arith.mulf %87, %84 : vector<32x32xf32>
    %89 = arith.select %86, %84, %88 : vector<32x32xi1>, vector<32x32xf32>
    %90 = arith.addf %89, %2 : vector<32x32xf32>
    %cst_23 = arith.constant dense<0xFF800000> : vector<32xf32>
    %91 = vector.multi_reduction <maximumf>, %90, %cst_23 [1] : vector<32x32xf32> to vector<32xf32>
    %92 = vector.shape_cast %91 : vector<32xf32> to vector<32x1xf32>
    %93 = vector.broadcast %92 : vector<32x1xf32> to vector<32x32xf32>
    %94 = arith.subf %90, %93 : vector<32x32xf32>
    %95 = math.exp %94 : vector<32x32xf32>
    %96 = arith.truncf %95 : vector<32x32xf32> to vector<32x32xbf16>
    %97 = vector.extract_strided_slice %10 {offsets = [0, 24], sizes = [32, 8], strides = [1, 1]} : vector<32x64xbf16> to vector<32x8xbf16>
    %cst_24 = arith.constant dense<0.000000e+00> : vector<32x8xf32>
    %98 = tpu.matmul %96, %97, %cst_24 {dimension_numbers = #tpu.dot_dimension_numbers<[1], [0], [0], [1], [0, 0, 1, 1], [], []>} : vector<32x32xbf16>, vector<32x8xbf16>, vector<32x8xf32> -> vector<32x8xf32>
    %cst_25 = arith.constant dense<0.000000e+00> : vector<32x1xf32>
    %99 = tpu.matmul %96, %3, %cst_25 {dimension_numbers = #tpu.dot_dimension_numbers<[1], [0], [0], [1], [0, 0, 1, 1], [], []>} : vector<32x32xbf16>, vector<32x1xbf16>, vector<32x1xf32> -> vector<32x1xf32>
    %100 = tpu.reciprocal %99 {approx = true} : vector<32x1xf32> -> vector<32x1xf32>
    %101 = vector.broadcast %100 : vector<32x1xf32> to vector<32x8xf32>
    %102 = arith.mulf %98, %101 : vector<32x8xf32>
    %103 = vector.extract_strided_slice %8 {offsets = [0, 4], sizes = [32, 1], strides = [1, 1]} : vector<32x8xf32> to vector<32x1xf32>
    %104 = vector.extract_strided_slice %9 {offsets = [4, 0], sizes = [1, 32], strides = [1, 1]} : vector<8x32xf32> to vector<1x32xf32>
    %105 = vector.broadcast %103 : vector<32x1xf32> to vector<32x32xf32>
    %106 = vector.broadcast %104 : vector<1x32xf32> to vector<32x32xf32>
    %107 = arith.addf %105, %106 : vector<32x32xf32>
    %cst_26 = arith.constant 0.000000e+00 : f32
    %108 = vector.broadcast %cst_26 : f32 to vector<32x32xf32>
    %109 = arith.cmpf ogt, %107, %108 : vector<32x32xf32>
    %cst_27 = arith.constant 2.000000e-01 : f32
    %110 = vector.broadcast %cst_27 : f32 to vector<32x32xf32>
    %111 = arith.mulf %110, %107 : vector<32x32xf32>
    %112 = arith.select %109, %107, %111 : vector<32x32xi1>, vector<32x32xf32>
    %113 = arith.addf %112, %2 : vector<32x32xf32>
    %cst_28 = arith.constant dense<0xFF800000> : vector<32xf32>
    %114 = vector.multi_reduction <maximumf>, %113, %cst_28 [1] : vector<32x32xf32> to vector<32xf32>
    %115 = vector.shape_cast %114 : vector<32xf32> to vector<32x1xf32>
    %116 = vector.broadcast %115 : vector<32x1xf32> to vector<32x32xf32>
    %117 = arith.subf %113, %116 : vector<32x32xf32>
    %118 = math.exp %117 : vector<32x32xf32>
    %119 = arith.truncf %118 : vector<32x32xf32> to vector<32x32xbf16>
    %120 = vector.extract_strided_slice %10 {offsets = [0, 32], sizes = [32, 8], strides = [1, 1]} : vector<32x64xbf16> to vector<32x8xbf16>
    %cst_29 = arith.constant dense<0.000000e+00> : vector<32x8xf32>
    %121 = tpu.matmul %119, %120, %cst_29 {dimension_numbers = #tpu.dot_dimension_numbers<[1], [0], [0], [1], [0, 0, 1, 1], [], []>} : vector<32x32xbf16>, vector<32x8xbf16>, vector<32x8xf32> -> vector<32x8xf32>
    %cst_30 = arith.constant dense<0.000000e+00> : vector<32x1xf32>
    %122 = tpu.matmul %119, %3, %cst_30 {dimension_numbers = #tpu.dot_dimension_numbers<[1], [0], [0], [1], [0, 0, 1, 1], [], []>} : vector<32x32xbf16>, vector<32x1xbf16>, vector<32x1xf32> -> vector<32x1xf32>
    %123 = tpu.reciprocal %122 {approx = true} : vector<32x1xf32> -> vector<32x1xf32>
    %124 = vector.broadcast %123 : vector<32x1xf32> to vector<32x8xf32>
    %125 = arith.mulf %121, %124 : vector<32x8xf32>
    %126 = vector.extract_strided_slice %8 {offsets = [0, 5], sizes = [32, 1], strides = [1, 1]} : vector<32x8xf32> to vector<32x1xf32>
    %127 = vector.extract_strided_slice %9 {offsets = [5, 0], sizes = [1, 32], strides = [1, 1]} : vector<8x32xf32> to vector<1x32xf32>
    %128 = vector.broadcast %126 : vector<32x1xf32> to vector<32x32xf32>
    %129 = vector.broadcast %127 : vector<1x32xf32> to vector<32x32xf32>
    %130 = arith.addf %128, %129 : vector<32x32xf32>
    %cst_31 = arith.constant 0.000000e+00 : f32
    %131 = vector.broadcast %cst_31 : f32 to vector<32x32xf32>
    %132 = arith.cmpf ogt, %130, %131 : vector<32x32xf32>
    %cst_32 = arith.constant 2.000000e-01 : f32
    %133 = vector.broadcast %cst_32 : f32 to vector<32x32xf32>
    %134 = arith.mulf %133, %130 : vector<32x32xf32>
    %135 = arith.select %132, %130, %134 : vector<32x32xi1>, vector<32x32xf32>
    %136 = arith.addf %135, %2 : vector<32x32xf32>
    %cst_33 = arith.constant dense<0xFF800000> : vector<32xf32>
    %137 = vector.multi_reduction <maximumf>, %136, %cst_33 [1] : vector<32x32xf32> to vector<32xf32>
    %138 = vector.shape_cast %137 : vector<32xf32> to vector<32x1xf32>
    %139 = vector.broadcast %138 : vector<32x1xf32> to vector<32x32xf32>
    %140 = arith.subf %136, %139 : vector<32x32xf32>
    %141 = math.exp %140 : vector<32x32xf32>
    %142 = arith.truncf %141 : vector<32x32xf32> to vector<32x32xbf16>
    %143 = vector.extract_strided_slice %10 {offsets = [0, 40], sizes = [32, 8], strides = [1, 1]} : vector<32x64xbf16> to vector<32x8xbf16>
    %cst_34 = arith.constant dense<0.000000e+00> : vector<32x8xf32>
    %144 = tpu.matmul %142, %143, %cst_34 {dimension_numbers = #tpu.dot_dimension_numbers<[1], [0], [0], [1], [0, 0, 1, 1], [], []>} : vector<32x32xbf16>, vector<32x8xbf16>, vector<32x8xf32> -> vector<32x8xf32>
    %cst_35 = arith.constant dense<0.000000e+00> : vector<32x1xf32>
    %145 = tpu.matmul %142, %3, %cst_35 {dimension_numbers = #tpu.dot_dimension_numbers<[1], [0], [0], [1], [0, 0, 1, 1], [], []>} : vector<32x32xbf16>, vector<32x1xbf16>, vector<32x1xf32> -> vector<32x1xf32>
    %146 = tpu.reciprocal %145 {approx = true} : vector<32x1xf32> -> vector<32x1xf32>
    %147 = vector.broadcast %146 : vector<32x1xf32> to vector<32x8xf32>
    %148 = arith.mulf %144, %147 : vector<32x8xf32>
    %149 = vector.extract_strided_slice %8 {offsets = [0, 6], sizes = [32, 1], strides = [1, 1]} : vector<32x8xf32> to vector<32x1xf32>
    %150 = vector.extract_strided_slice %9 {offsets = [6, 0], sizes = [1, 32], strides = [1, 1]} : vector<8x32xf32> to vector<1x32xf32>
    %151 = vector.broadcast %149 : vector<32x1xf32> to vector<32x32xf32>
    %152 = vector.broadcast %150 : vector<1x32xf32> to vector<32x32xf32>
    %153 = arith.addf %151, %152 : vector<32x32xf32>
    %cst_36 = arith.constant 0.000000e+00 : f32
    %154 = vector.broadcast %cst_36 : f32 to vector<32x32xf32>
    %155 = arith.cmpf ogt, %153, %154 : vector<32x32xf32>
    %cst_37 = arith.constant 2.000000e-01 : f32
    %156 = vector.broadcast %cst_37 : f32 to vector<32x32xf32>
    %157 = arith.mulf %156, %153 : vector<32x32xf32>
    %158 = arith.select %155, %153, %157 : vector<32x32xi1>, vector<32x32xf32>
    %159 = arith.addf %158, %2 : vector<32x32xf32>
    %cst_38 = arith.constant dense<0xFF800000> : vector<32xf32>
    %160 = vector.multi_reduction <maximumf>, %159, %cst_38 [1] : vector<32x32xf32> to vector<32xf32>
    %161 = vector.shape_cast %160 : vector<32xf32> to vector<32x1xf32>
    %162 = vector.broadcast %161 : vector<32x1xf32> to vector<32x32xf32>
    %163 = arith.subf %159, %162 : vector<32x32xf32>
    %164 = math.exp %163 : vector<32x32xf32>
    %165 = arith.truncf %164 : vector<32x32xf32> to vector<32x32xbf16>
    %166 = vector.extract_strided_slice %10 {offsets = [0, 48], sizes = [32, 8], strides = [1, 1]} : vector<32x64xbf16> to vector<32x8xbf16>
    %cst_39 = arith.constant dense<0.000000e+00> : vector<32x8xf32>
    %167 = tpu.matmul %165, %166, %cst_39 {dimension_numbers = #tpu.dot_dimension_numbers<[1], [0], [0], [1], [0, 0, 1, 1], [], []>} : vector<32x32xbf16>, vector<32x8xbf16>, vector<32x8xf32> -> vector<32x8xf32>
    %cst_40 = arith.constant dense<0.000000e+00> : vector<32x1xf32>
    %168 = tpu.matmul %165, %3, %cst_40 {dimension_numbers = #tpu.dot_dimension_numbers<[1], [0], [0], [1], [0, 0, 1, 1], [], []>} : vector<32x32xbf16>, vector<32x1xbf16>, vector<32x1xf32> -> vector<32x1xf32>
    %169 = tpu.reciprocal %168 {approx = true} : vector<32x1xf32> -> vector<32x1xf32>
    %170 = vector.broadcast %169 : vector<32x1xf32> to vector<32x8xf32>
    %171 = arith.mulf %167, %170 : vector<32x8xf32>
    %172 = vector.extract_strided_slice %8 {offsets = [0, 7], sizes = [32, 1], strides = [1, 1]} : vector<32x8xf32> to vector<32x1xf32>
    %173 = vector.extract_strided_slice %9 {offsets = [7, 0], sizes = [1, 32], strides = [1, 1]} : vector<8x32xf32> to vector<1x32xf32>
    %174 = vector.broadcast %172 : vector<32x1xf32> to vector<32x32xf32>
    %175 = vector.broadcast %173 : vector<1x32xf32> to vector<32x32xf32>
    %176 = arith.addf %174, %175 : vector<32x32xf32>
    %cst_41 = arith.constant 0.000000e+00 : f32
    %177 = vector.broadcast %cst_41 : f32 to vector<32x32xf32>
    %178 = arith.cmpf ogt, %176, %177 : vector<32x32xf32>
    %cst_42 = arith.constant 2.000000e-01 : f32
    %179 = vector.broadcast %cst_42 : f32 to vector<32x32xf32>
    %180 = arith.mulf %179, %176 : vector<32x32xf32>
    %181 = arith.select %178, %176, %180 : vector<32x32xi1>, vector<32x32xf32>
    %182 = arith.addf %181, %2 : vector<32x32xf32>
    %cst_43 = arith.constant dense<0xFF800000> : vector<32xf32>
    %183 = vector.multi_reduction <maximumf>, %182, %cst_43 [1] : vector<32x32xf32> to vector<32xf32>
    %184 = vector.shape_cast %183 : vector<32xf32> to vector<32x1xf32>
    %185 = vector.broadcast %184 : vector<32x1xf32> to vector<32x32xf32>
    %186 = arith.subf %182, %185 : vector<32x32xf32>
    %187 = math.exp %186 : vector<32x32xf32>
    %188 = arith.truncf %187 : vector<32x32xf32> to vector<32x32xbf16>
    %189 = vector.extract_strided_slice %10 {offsets = [0, 56], sizes = [32, 8], strides = [1, 1]} : vector<32x64xbf16> to vector<32x8xbf16>
    %cst_44 = arith.constant dense<0.000000e+00> : vector<32x8xf32>
    %190 = tpu.matmul %188, %189, %cst_44 {dimension_numbers = #tpu.dot_dimension_numbers<[1], [0], [0], [1], [0, 0, 1, 1], [], []>} : vector<32x32xbf16>, vector<32x8xbf16>, vector<32x8xf32> -> vector<32x8xf32>
    %cst_45 = arith.constant dense<0.000000e+00> : vector<32x1xf32>
    %191 = tpu.matmul %188, %3, %cst_45 {dimension_numbers = #tpu.dot_dimension_numbers<[1], [0], [0], [1], [0, 0, 1, 1], [], []>} : vector<32x32xbf16>, vector<32x1xbf16>, vector<32x1xf32> -> vector<32x1xf32>
    %192 = tpu.reciprocal %191 {approx = true} : vector<32x1xf32> -> vector<32x1xf32>
    %193 = vector.broadcast %192 : vector<32x1xf32> to vector<32x8xf32>
    %194 = arith.mulf %190, %193 : vector<32x8xf32>
    %195 = tpu.concatenate %33, %56, %79, %102, %125, %148, %171, %194 in 1 : vector<32x8xf32>, vector<32x8xf32>, vector<32x8xf32>, vector<32x8xf32>, vector<32x8xf32>, vector<32x8xf32>, vector<32x8xf32>, vector<32x8xf32> -> vector<32x64xf32>
    %c0_46 = arith.constant 0 : index
    %c0_47 = arith.constant 0 : index
    %196 = vector.load %arg3[%c0_46, %c0_47] : memref<1x64xf32, #tpu.memory_space<vmem>>, vector<1x64xf32>
    %197 = vector.broadcast %196 : vector<1x64xf32> to vector<32x64xf32>
    %198 = arith.addf %195, %197 : vector<32x64xf32>
    %cst_48 = arith.constant 0.000000e+00 : f32
    %199 = vector.broadcast %cst_48 : f32 to vector<32x64xf32>
    %200 = arith.cmpf ogt, %198, %199 : vector<32x64xf32>
    %cst_49 = arith.constant 0.000000e+00 : f32
    %201 = vector.broadcast %cst_49 : f32 to vector<32x64xf32>
    %202 = arith.minimumf %198, %201 : vector<32x64xf32>
    %203 = math.exp %202 : vector<32x64xf32>
    %cst_50 = arith.constant 1.000000e+00 : f32
    %204 = vector.broadcast %cst_50 : f32 to vector<32x64xf32>
    %205 = arith.subf %203, %204 : vector<32x64xf32>
    %206 = arith.select %200, %198, %205 : vector<32x64xi1>, vector<32x64xf32>
    %c0_51 = arith.constant 0 : index
    %c0_52 = arith.constant 0 : index
    %207 = vector.load %arg4[%c0_51, %c0_52] : memref<64x130xf32, #tpu.memory_space<vmem>>, vector<64x130xf32>
    %cst_53 = arith.constant dense<0.000000e+00> : vector<32x130xf32>
    %208 = tpu.matmul %206, %207, %cst_53 {dimension_numbers = #tpu.dot_dimension_numbers<[1], [0], [0], [1], [0, 0, 1, 1], [], []>} : vector<32x64xf32>, vector<64x130xf32>, vector<32x130xf32> -> vector<32x130xf32>
    %209 = vector.extract_strided_slice %208 {offsets = [0, 0], sizes = [32, 128], strides = [1, 1]} : vector<32x130xf32> to vector<32x128xf32>
    %210 = vector.extract_strided_slice %208 {offsets = [0, 128], sizes = [32, 1], strides = [1, 1]} : vector<32x130xf32> to vector<32x1xf32>
    %211 = vector.extract_strided_slice %208 {offsets = [0, 129], sizes = [32, 1], strides = [1, 1]} : vector<32x130xf32> to vector<32x1xf32>
    %212 = tpu.transpose %210, [1, 0] : vector<32x1xf32> -> vector<1x32xf32>
    %213 = vector.broadcast %211 : vector<32x1xf32> to vector<32x32xf32>
    %214 = vector.broadcast %212 : vector<1x32xf32> to vector<32x32xf32>
    %215 = arith.addf %213, %214 : vector<32x32xf32>
    %cst_54 = arith.constant 0.000000e+00 : f32
    %216 = vector.broadcast %cst_54 : f32 to vector<32x32xf32>
    %217 = arith.cmpf ogt, %215, %216 : vector<32x32xf32>
    %cst_55 = arith.constant 2.000000e-01 : f32
    %218 = vector.broadcast %cst_55 : f32 to vector<32x32xf32>
    %219 = arith.mulf %218, %215 : vector<32x32xf32>
    %220 = arith.select %217, %215, %219 : vector<32x32xi1>, vector<32x32xf32>
    %221 = arith.addf %220, %2 : vector<32x32xf32>
    %cst_56 = arith.constant dense<0xFF800000> : vector<32xf32>
    %222 = vector.multi_reduction <maximumf>, %221, %cst_56 [1] : vector<32x32xf32> to vector<32xf32>
    %223 = vector.shape_cast %222 : vector<32xf32> to vector<32x1xf32>
    %224 = vector.broadcast %223 : vector<32x1xf32> to vector<32x32xf32>
    %225 = arith.subf %221, %224 : vector<32x32xf32>
    %226 = math.exp %225 : vector<32x32xf32>
    %227 = arith.truncf %226 : vector<32x32xf32> to vector<32x32xbf16>
    %228 = arith.truncf %209 : vector<32x128xf32> to vector<32x128xbf16>
    %cst_57 = arith.constant dense<0.000000e+00> : vector<32x128xf32>
    %229 = tpu.matmul %227, %228, %cst_57 {dimension_numbers = #tpu.dot_dimension_numbers<[1], [0], [0], [1], [0, 0, 1, 1], [], []>} : vector<32x32xbf16>, vector<32x128xbf16>, vector<32x128xf32> -> vector<32x128xf32>
    %cst_58 = arith.constant dense<0.000000e+00> : vector<32x1xf32>
    %230 = tpu.matmul %227, %3, %cst_58 {dimension_numbers = #tpu.dot_dimension_numbers<[1], [0], [0], [1], [0, 0, 1, 1], [], []>} : vector<32x32xbf16>, vector<32x1xbf16>, vector<32x1xf32> -> vector<32x1xf32>
    %231 = tpu.reciprocal %230 {approx = true} : vector<32x1xf32> -> vector<32x1xf32>
    %232 = vector.broadcast %231 : vector<32x1xf32> to vector<32x128xf32>
    %233 = arith.mulf %229, %232 : vector<32x128xf32>
    %c0_59 = arith.constant 0 : index
    %c0_60 = arith.constant 0 : index
    %234 = vector.load %arg5[%c0_59, %c0_60] : memref<1x128xf32, #tpu.memory_space<vmem>>, vector<1x128xf32>
    %235 = vector.broadcast %234 : vector<1x128xf32> to vector<32x128xf32>
    %236 = arith.addf %233, %235 : vector<32x128xf32>
    %cst_61 = arith.constant dense<0xFF800000> : vector<32xf32>
    %237 = vector.multi_reduction <maximumf>, %236, %cst_61 [1] : vector<32x128xf32> to vector<32xf32>
    %238 = vector.shape_cast %237 : vector<32xf32> to vector<32x1xf32>
    %239 = vector.broadcast %238 : vector<32x1xf32> to vector<32x128xf32>
    %240 = arith.subf %236, %239 : vector<32x128xf32>
    %241 = math.exp %240 : vector<32x128xf32>
    %cst_62 = arith.constant dense<0.000000e+00> : vector<32xf32>
    %242 = vector.multi_reduction <add>, %241, %cst_62 [1] : vector<32x128xf32> to vector<32xf32>
    %243 = vector.shape_cast %242 : vector<32xf32> to vector<32x1xf32>
    %244 = math.log %243 : vector<32x1xf32>
    %245 = vector.broadcast %244 : vector<32x1xf32> to vector<32x128xf32>
    %246 = arith.subf %240, %245 : vector<32x128xf32>
    %c0_63 = arith.constant 0 : index
    %c0_64 = arith.constant 0 : index
    %247 = vector.load %arg6[%c0_63, %c0_64] : memref<32x128xf32, #tpu.memory_space<vmem>>, vector<32x128xf32>
    tpu.vector_store %arg6[%c0_63, %c0_64], %246 {strides = array<i32>} : memref<32x128xf32, #tpu.memory_space<vmem>>, vector<32x128xf32>,
    return
  }
}

</mosaic_0001>

<bundles_post_ra>
// kernel: net_forward.1
= control target key start
LH: loop header
LB: loop body
LE: loop exit
PB: predicated region body
PF: predicated region fallthrough
CT: control target
= control target key end

     0   :  { %vm39_vm0 = vcmask 130048   ;;  %v2929_v3 = vmov 72   ;;  %v2930_v7 = vmov 73   ;;  %s2931_s8 = smov 64   ;;  %v2932_v11 = vmov 74   ;;  %s2940_s12 = smov 104   ;;  %s3667_s2 = inlined_call_operand.vmem [shape: f32[16,80], index: 2, kind: input, shape index: {}]   ;;  %s3668_s0 = inlined_call_operand.vmem [shape: f32[32,16], index: 0, kind: input, shape index: {}]   ;;  %s3669_s1 = inlined_call_operand.vmem [shape: bf16[32,32], index: 1, kind: input, shape index: {}]   ;;  %s3670_s4 = inlined_call_operand.vmem [shape: f32[64,130], index: 4, kind: input, shape index: {}]   ;;  %s3671_s3 = inlined_call_operand.vmem [shape: f32[1,64], index: 3, kind: input, shape index: {}]   ;;  %s3672_s5 = inlined_call_operand.vmem [shape: f32[1,128], index: 5, kind: input, shape index: {}]   ;;  %s3673_s6 = inlined_call_operand.vmem [shape: f32[32,128], index: 6, kind: output, shape index: {}]  }
   0x1   :  { %v38_v0 = vld [vmem:[%s3667_s2 + $0x8] sm:$0xff]  ;;  %v37_v1 = vld [vmem:[%s3667_s2] sm:$0xff]  ;;  %2727 = vset.pattern.permute.xlu1 %v2929_v3  ;;  %v27_v5 = vld [vmem:[%s3668_s0 + $0x10] sm:$0xff]  ;;  %2728 = vset.pattern.permute.xlu0 %v2930_v7  ;;  %v2933_v14 = vmov 75   ;;  %v2934_v16 = vmov 76   ;;  %v2935_v17 = vmov 78   ;;  %v203_v43 = vlaneseq }
   0x2   :  { %v25_v2 = vld [vmem:[%s3668_s0] sm:$0xff]  ;;  %2546 = vmatprep.subr.mxu0 %v38_v0  ;;  %v26_v4 = vld [vmem:[%s3668_s0 + $0x8] sm:$0xff]  ;;  %v28_v6 = vld [vmem:[%s3668_s0 + $0x18] sm:$0xff]  ;;  %v2936_v18 = vmov 77   ;;  %v2937_v19 = vmov 79   ;;  %vm227_vm1 = vcmask 261120  }
   0x3   :  { %2550 = vmatprep.mubr.msk.f32.mxu0 %vm39_vm0, %v25_v2  ;;  %2547 = vmatpush3.msra.mxu0 %v38_v0  ;;  %v3089_v45 = vshrl.u32 %v203_v43, 7  ;;  %v2460_v48 = vld [vmem:[%s3669_s1] sm:$0xff]   ;;  %v2467_v52 = vld [vmem:[%s3669_s1 + $0x8] sm:$0xff]   ;;  %s2939_s1 = smov 120   ;;  %s2941_s13 = smov 96  }
   0x4   :  { %2548 = vmatprep.subr.mxu0 %v37_v1  ;;  %v3106_v54 = vunpack.c.h.bf16 %v2460_v48  ;;  %v3114_v58 = vunpack.c.l.bf16 %v2460_v48  ;;  %v3120_v61 = vunpack.c.h.bf16 %v2467_v52  ;;  %v3122_v62 = vunpack.c.l.bf16 %v2467_v52  ;;  %s2942_s14 = smov 88   ;;  %s2943_s15 = smov 112  }
   0x5   :  { %2549 = vmatpush3.msra.mxu0 %v37_v1  ;;  %v205_v49 = vsub.s32 0, %v3089_v45  ;;  %v404_v50 = vsub.s32 1, %v3089_v45  ;;  %v610_v51 = vsub.s32 2, %v3089_v45  ;;  %v814_v55 = vsub.s32 3, %v3089_v45  ;;  %s2944_s16 = smov 80   ;;  %s2945_s17 = smov 72  }
   0x6   :  { %2551 = vmatmul.mubr.msk.f32.vlgmr.msra.gmra.mxu0 %vm39_vm0, %v26_v4  ;;  %v1018_v63 = vsub.s32 4, %v3089_v45  ;;  %s2947_s18 = smov 8   ;;  %s2948_s19 = smov 16  }
   0x7   :  { %2553 = vmatprep.mubr.msk.f32.mxu0 %vm39_vm0, %v27_v5  ;;  %s2949_s20 = smov 24   ;;  %s2950_s21 = smov 32  }
   0x8   :  { %s2951_s22 = smov 40   ;;  %s2952_s23 = smov 48  }
   0x9   :  { %s2953_s24 = smov 56  }
   0xa   :  { %2554 = vmatmul.mubr.msk.f32.gmra.mxu0 %vm39_vm0, %v28_v6 }
  0xc6   :  { %v3014_v8 = vpop.f32.mrf.mxu0 }
  0xc7   :  { %192 = vperm.xlu1 %2727, %v3014_v8   ;;  %143 = vrot.lane.b32.xlu0 %v3014_v8, %s2931_s8 }
  0xc8   :  { %v118_v9 = vpop.f32.mrf.mxu0 }
  0xc9   :  { %v3031_v15 = vpack.c.bf16 %v3014_v8, %v118_v9 }
  0xca   :  { %v3019_v10 = vpop.f32.mrf.mxu0 }
  0xcb   :  { %2729 = vset.pattern.permute.xlu1 %v2932_v11  ;;  %391 = vperm.xlu0 %2728, %v3014_v8  }
  0xcc   :  { %597 = vperm.xlu1 %2729, %v3014_v8   ;;  %v3023_v12 = vpop.f32.mrf.mxu0 }
  0xcd   :  { %v3027_v13 = vpack.c.bf16 %v3019_v10, %v3023_v12 }
  0xcf   :  { %2730 = vset.pattern.permute.xlu0 %v2933_v14  ;;  %2556 = vmatprep.subr.bf16.mxu1 %v3027_v13 }
  0xd0   :  { %2732 = vset.pattern.permute.xlu1 %v2930_v7  ;;  %801 = vperm.xlu0 %2730, %v3014_v8  }
  0xd1   :  { %2557 = vmatpush3.bf16.msra.mxu1 %v3027_v13  ;;  %387 = vperm.xlu1 %2732, %v118_v9  }
  0xd2   :  { %2558 = vmatprep.subr.bf16.mxu1 %v3031_v15 }
  0xd4   :  { %141 = vrot.lane.b32.xlu0 %v118_v9, %s2931_s8 }
  0xd5   :  { %2559 = vmatpush3.bf16.msra.mxu1 %v3031_v15  ;;  %2734 = vset.pattern.permute.xlu1 %v2933_v14 }
  0xd6   :  { %797 = vperm.xlu1 %2734, %v118_v9   ;;  %2731 = vset.pattern.permute.xlu0 %v2929_v3 }
  0xd8   :  { %188 = vperm.xlu0 %2731, %v118_v9  }
  0xda   :  { %147 = vrot.lane.b32.xlu1 %v3019_v10, %s2931_s8 }
  0xdb   :  { %2736 = vset.pattern.permute.xlu1 %v2930_v7 }
  0xdc   :  { %2733 = vset.pattern.permute.xlu0 %v2932_v11 }
  0xdd   :  { %593 = vperm.xlu0 %2733, %v118_v9  }
  0xde   :  { %399 = vperm.xlu1 %2736, %v3019_v10  }
  0xe1   :  { %2735 = vset.pattern.permute.xlu0 %v2929_v3 }
  0xe2   :  { %200 = vperm.xlu0 %2735, %v3019_v10   ;;  %2738 = vset.pattern.permute.xlu1 %v2933_v14 }
  0xe3   :  { %809 = vperm.xlu1 %2738, %v3019_v10  }
  0xe6   :  { %2737 = vset.pattern.permute.xlu0 %v2932_v11 }
  0xe7   :  { %605 = vperm.xlu0 %2737, %v3019_v10   ;;  %145 = vrot.lane.b32.xlu1 %v3023_v12, %s2931_s8 }
  0xe8   :  { %2739 = vset.pattern.permute.xlu1 %v2934_v16 }
  0xeb   :  { %2744 = vset.pattern.permute.xlu0 %v2935_v17  ;;  %1001 = vperm.xlu1 %2739, %v118_v9  }
  0xec   :  { %1421 = vperm.xlu0 %2744, %v3019_v10  }
  0xef   :  { %1005 = vperm.xlu1 %2739, %v3014_v8  }
  0xf3   :  { %1013 = vperm.xlu1 %2739, %v3019_v10  }
  0xf7   :  { %2740 = vset.pattern.permute.xlu1 %v2936_v18 }
  0xf8   :  { %1205 = vperm.xlu1 %2740, %v118_v9  }
  0xfc   :  { %1209 = vperm.xlu1 %2740, %v3014_v8  }
 0x100   :  { %1217 = vperm.xlu1 %2740, %v3019_v10  }
 0x104   :  { %2741 = vset.pattern.permute.xlu1 %v2935_v17 }
 0x105   :  { %1409 = vperm.xlu1 %2741, %v118_v9  }
 0x109   :  { %2742 = vset.pattern.permute.xlu1 %v2929_v3 }
 0x10a   :  { %196 = vperm.xlu1 %2742, %v3023_v12  }
 0x10e   :  { %2743 = vset.pattern.permute.xlu1 %v2935_v17 }
 0x10f   :  { %1413 = vperm.xlu1 %2743, %v3014_v8  }
 0x113   :  { %2745 = vset.pattern.permute.xlu1 %v2930_v7 }
 0x114   :  { %395 = vperm.xlu1 %2745, %v3023_v12  }
 0x118   :  { %2746 = vset.pattern.permute.xlu1 %v2937_v19 }
 0x119   :  { %1613 = vperm.xlu1 %2746, %v118_v9  }
 0x11d   :  { %2747 = vset.pattern.permute.xlu1 %v2932_v11 }
 0x11e   :  { %601 = vperm.xlu1 %2747, %v3023_v12  }
 0x122   :  { %2748 = vset.pattern.permute.xlu1 %v2937_v19 }
 0x123   :  { %1617 = vperm.xlu1 %2748, %v3014_v8  }
 0x127   :  { %2749 = vset.pattern.permute.xlu1 %v2933_v14 }
 0x128   :  { %805 = vperm.xlu1 %2749, %v3023_v12  }
 0x12c   :  { %2750 = vset.pattern.permute.xlu1 %v2937_v19 }
 0x12d   :  { %1625 = vperm.xlu1 %2750, %v3019_v10  }
 0x131   :  { %2751 = vset.pattern.permute.xlu1 %v2934_v16 }
 0x132   :  { %1009 = vperm.xlu1 %2751, %v3023_v12  }
 0x136   :  { %2752 = vset.pattern.permute.xlu1 %v2936_v18 }
 0x137   :  { %1213 = vperm.xlu1 %2752, %v3023_v12  }
 0x139   :  { %v144_v20 = vpop.permute.xlu0 %143 }
 0x13b   :  { %2753 = vset.pattern.permute.xlu1 %v2935_v17 }
 0x13c   :  { %1417 = vperm.xlu1 %2753, %v3023_v12  }
 0x140   :  { %2754 = vset.pattern.permute.xlu1 %v2937_v19 }
 0x141   :  { %1621 = vperm.xlu1 %2754, %v3023_v12  }
 0x142   :  { %v193_v21 = vpop.permute.xlu1 %192 }
 0x146   :  { %v3065_v22 = vpop.permute.xlu0 %391 }
 0x147   :  { %v598_v23 = vpop.permute.xlu1 %597 }
 0x14b   :  { %v3067_v24 = vpop.permute.xlu0 %801 }
 0x14c   :  { %v388_v25 = vpop.permute.xlu1 %387 }
 0x14f   :  { %v142_v26 = vpop.permute.xlu0 %141 }
 0x150   :  { %153 = vxpose.xlu0.b32.start [1/4] (short) (narrow) %v142_v26, 8 }
 0x151   :  { %v3069_v27 = vpop.permute.xlu1 %797 }
 0x153   :  { %v189_v37 = vpop.permute.xlu0 %188 }
 0x154   :  { %154 = vxpose.xlu0.b32.cont [2/4] (short) (narrow) %v144_v20, 8 }
 0x155   :  { %v148_v28 = vpop.permute.xlu1 %147 }
 0x158   :  { %v3085_v39 = vpop.permute.xlu0 %593 }
 0x159   :  { %v400_v29 = vpop.permute.xlu1 %399 }
 0x15d   :  { %v201_v41 = vpop.permute.xlu0 %200 }
 0x15e   :  { %v3071_v30 = vpop.permute.xlu1 %809 }
 0x162   :  { %v146_v31 = vpop.permute.xlu1 %145  ;;  %v606_v44 = vpop.permute.xlu0 %605 }
 0x163   :  { %155 = vxpose.xlu0.b32.cont [3/4] (short) (narrow) %v146_v31, 8 }
 0x166   :  { %v3073_v32 = vpop.permute.xlu1 %1001 }
 0x167   :  { %156 = vxpose.xlu0.b32.end [4/4] (short) (narrow) %v148_v28, 8  ;;  %v3093_v47 = vpop.permute.xlu0 %1421 }
 0x16a   :  { %v3075_v33 = vpop.permute.xlu1 %1005 }
 0x16e   :  { %v3077_v34 = vpop.permute.xlu1 %1013 }
 0x173   :  { %v3079_v35 = vpop.permute.xlu1 %1205 }
 0x177   :  { %v3081_v36 = vpop.permute.xlu1 %1209 }
 0x17b   :  { %v3083_v38 = vpop.permute.xlu1 %1217 }
 0x180   :  { %v3087_v40 = vpop.permute.xlu1 %1409 }
 0x185   :  { %v197_v42 = vpop.permute.xlu1 %196 }
 0x18a   :  { %v3091_v46 = vpop.permute.xlu1 %1413 }
 0x18f   :  { %v3109_v56 = vpop.permute.xlu1 %395 }
 0x194   :  { %v3127_v12 = vpop.permute.xlu1 %1613 }
 0x1d7   :  { %v3104_v53 = vpop.trf.xlu0 }
 0x1d8   :  { %v206_v57 = vrot.slane %v3104_v53, %v205_v49  ;;  %v405_v59 = vrot.slane %v3104_v53, %v404_v50  ;;  %v3118_v60 = vrot.slane %v3104_v53, %v610_v51  ;;  %v3139_v26 = vrot.slane %v3104_v53, %v814_v55  ;;  %v602_v50 = vpop.permute.xlu1 %601 }
 0x1da   :  { %v208_v0 = vadd.f32 %v206_v57, %v193_v21  ;;  %v207_v1 = vadd.f32 %v206_v57, %v189_v37  ;;  %v409_v2 = vadd.f32 %v405_v59, %v400_v29  ;;  %v209_v3 = vadd.f32 %v206_v57, %v197_v42 }
 0x1db   :  { %v613_v4 = vadd.f32 %v3118_v60, %v598_v23  ;;  %v210_v5 = vadd.f32 %v206_v57, %v201_v41  ;;  %v615_v6 = vadd.f32 %v3118_v60, %v606_v44  ;;  %v406_v7 = vadd.f32 %v405_v59, %v388_v25 }
 0x1dc   :  { %vm212_vm2 = vcmp.gt.f32.partialorder %v208_v0, 0.0  ;;  %v216_v8 = vmul.f32 0.2, %v208_v0  ;;  %vm211_vm3 = vcmp.gt.f32.partialorder %v207_v1, 0.0  ;;  %v215_v9 = vmul.f32 0.2, %v207_v1 }
 0x1dd   :  { %vm413_vm4 = vcmp.gt.f32.partialorder %v409_v2, 0.0  ;;  %v417_v10 = vmul.f32 0.2, %v409_v2  ;;  %vm213_vm5 = vcmp.gt.f32.partialorder %v209_v3, 0.0  ;;  %v217_v11 = vmul.f32 0.2, %v209_v3 }
 0x1de   :  { %v220_v14 = vsel %vm212_vm2, %v208_v0, %v216_v8  ;;  %v219_v16 = vsel %vm211_vm3, %v207_v1, %v215_v9  ;;  %vm617_vm6 = vcmp.gt.f32.partialorder %v613_v4, 0.0  ;;  %v621_v17 = vmul.f32 0.2, %v613_v4 }
 0x1df   :  { %v3130_v18 = vadd.f32 %v3106_v54, %v220_v14  ;;  %v3133_v19 = vadd.f32 %v3114_v58, %v219_v16  ;;  %v421_v20 = vsel %vm413_vm4, %v409_v2, %v417_v10  ;;  %v221_v21 = vsel %vm213_vm5, %v209_v3, %v217_v11 }
 0x1e0   :  { %v3136_v23 = vadd.f32 %v3120_v61, %v421_v20  ;;  %v625_v25 = vsel %vm617_vm6, %v613_v4, %v621_v17  ;;  %vm214_vm7 = vcmp.gt.f32.partialorder %v210_v5, 0.0  ;;  %v3146_v31 = vadd.f32 %v3122_v62, %v221_v21 }
 0x1e1   :  { %v231_v28 = vsel %vm227_vm1, %v3130_v18, -inf  ;;  %v228_v29 = vsel %vm227_vm1, %v3133_v19, -inf  ;;  %v218_v37 = vmul.f32 0.2, %v210_v5  ;;  %vm619_vm8 = vcmp.gt.f32.partialorder %v615_v6, 0.0 }
 0x1e2   :  { %232 = vmax.xlane.f32.xlu0 %v231_v28  ;;  %229 = vmax.xlane.f32.xlu1 %v228_v29  ;;  %v623_v41 = vmul.f32 0.2, %v615_v6  ;;  %v3149_v42 = vrot.slane %v3104_v53, %v1018_v63  ;;  %v3152_v43 = vadd.f32 %v3106_v54, %v625_v25  ;;  %vm410_vm9 = vcmp.gt.f32.partialorder %v406_v7, 0.0 }
 0x1e3   :  { %v222_v44 = vsel %vm214_vm7, %v210_v5, %v218_v37  ;;  %v414_v48 = vmul.f32 0.2, %v406_v7  ;;  %v435_v51 = vsel %vm227_vm1, %v3136_v23, -inf  ;;  %v817_v55 = vadd.f32 %v3139_v26, %v3067_v24 }
 0x1e4   :  { %v627_v52 = vsel %vm619_vm8, %v615_v6, %v623_v41  ;;  %v407_v57 = vadd.f32 %v405_v59, %v3065_v22  ;;  %v234_v63 = vsel %vm227_vm1, %v3146_v31, -inf  ;;  %v3162_v0 = vadd.f32 %v3120_v61, %v222_v44 }
 0x1e5   :  { %v418_v1 = vsel %vm410_vm9, %v406_v7, %v414_v48  ;;  %v819_v2 = vadd.f32 %v3139_v26, %v3071_v30  ;;  %vm821_vm10 = vcmp.gt.f32.partialorder %v817_v55, 0.0  ;;  %v825_v3 = vmul.f32 0.2, %v817_v55 }
 0x1e6   :  { %436 = vmax.xlane.f32.xlu0 %v435_v51  ;;  %235 = vmax.xlane.f32.xlu1 %v234_v63  ;;  %v408_v4 = vadd.f32 %v405_v59, %v3109_v56  ;;  %v1222_v24 = vsub.s32 5, %v3089_v45  ;;  %v3169_v22 = vadd.f32 %v3120_v61, %v627_v52  ;;  %vm411_vm11 = vcmp.gt.f32.partialorder %v407_v57, 0.0  ;;  %v3180_v59 = vpop.permute.xlu1 %1617 }
 0x1e7   :  { %v415_v5 = vmul.f32 0.2, %v407_v57  ;;  %v635_v6 = vsel %vm227_vm1, %v3152_v43, -inf  ;;  %v3174_v7 = vadd.f32 %v3114_v58, %v418_v1  ;;  %v829_v30 = vsel %vm821_vm10, %v817_v55, %v825_v3 }
 0x1e8   :  { %v827_v8 = vmul.f32 0.2, %v819_v2  ;;  %v237_v9 = vsel %vm227_vm1, %v3162_v0, -inf  ;;  %vm823_vm12 = vcmp.gt.f32.partialorder %v819_v2, 0.0  ;;  %v1021_v56 = vadd.f32 %v3149_v42, %v3075_v33 }
 0x1e9   :  { %v419_v10 = vsel %vm411_vm11, %v407_v57, %v415_v5  ;;  %v416_v11 = vmul.f32 0.2, %v408_v4  ;;  %v612_v14 = vadd.f32 %v3118_v60, %v3085_v39  ;;  %v3185_v16 = vrot.slane %v3104_v53, %v1222_v24 }
 0x1ea   :  { %636 = vmax.xlane.f32.xlu0 %v635_v6  ;;  %238 = vmax.xlane.f32.xlu1 %v237_v9  ;;  %v641_v17 = vsel %vm227_vm1, %v3169_v22, -inf  ;;  %v3190_v20 = vadd.f32 %v3106_v54, %v829_v30  ;;  %v3193_v21 = vadd.f32 %v3106_v54, %v419_v10  ;;  %vm412_vm13 = vcmp.gt.f32.partialorder %v408_v4, 0.0  ;;  %v806_v57 = vpop.permute.xlu1 %805 }
 0x1eb   :  { %v426_v33 = vsel %vm227_vm1, %v3174_v7, -inf  ;;  %v831_v25 = vsel %vm823_vm12, %v819_v2, %v827_v8  ;;  %vm1025_vm14 = vcmp.gt.f32.partialorder %v1021_v56, 0.0  ;;  %v1029_v28 = vmul.f32 0.2, %v1021_v56 }
 0x1ec   :  { %vm616_vm15 = vcmp.gt.f32.partialorder %v612_v14, 0.0  ;;  %v620_v39 = vmul.f32 0.2, %v612_v14  ;;  %v1023_v29 = vadd.f32 %v3149_v42, %v3077_v34  ;;  %v614_v37 = vadd.f32 %v3118_v60, %v602_v50 }
 0x1ed   :  { %v420_v41 = vsel %vm412_vm13, %v408_v4, %v416_v11  ;;  %v1426_v44 = vsub.s32 6, %v3089_v45  ;;  %v839_v48 = vsel %vm227_vm1, %v3190_v20, -inf  ;;  %v429_v51 = vsel %vm227_vm1, %v3193_v21, -inf }
 0x1ee   :  { %642 = vmax.xlane.f32.xlu0 %v641_v17  ;;  %427 = vmax.xlane.f32.xlu1 %v426_v33  ;;  %v3206_v52 = vadd.f32 %v3120_v61, %v831_v25  ;;  %v1033_v55 = vsel %vm1025_vm14, %v1021_v56, %v1029_v28  ;;  %v624_v63 = vsel %vm616_vm15, %v612_v14, %v620_v39  ;;  %v1031_v34 = vmul.f32 0.2, %v1023_v29  ;;  %v1626_v56 = vpop.permute.xlu1 %1625 }
 0x1ef   :  { %v622_v1 = vmul.f32 0.2, %v614_v37  ;;  %v1225_v60 = vadd.f32 %v3185_v16, %v3081_v36  ;;  %v3211_v50 = vadd.f32 %v3122_v62, %v420_v41  ;;  %vm1027_vm2 = vcmp.gt.f32.partialorder %v1023_v29, 0.0 }
 0x1f0   :  { %vm618_vm3 = vcmp.gt.f32.partialorder %v614_v37, 0.0  ;;  %v816_v2 = vadd.f32 %v3139_v26, %v3069_v27  ;;  %v845_v3 = vsel %vm227_vm1, %v3206_v52, -inf  ;;  %v3218_v4 = vadd.f32 %v3106_v54, %v1033_v55 }
 0x1f1   :  { %v3221_v24 = vadd.f32 %v3114_v58, %v624_v63  ;;  %v3224_v36 = vrot.slane %v3104_v53, %v1426_v44  ;;  %v1035_v5 = vsel %vm1027_vm2, %v1023_v29, %v1031_v34  ;;  %v626_v6 = vsel %vm618_vm3, %v614_v37, %v622_v1 }
 0x1f2   :  { %840 = vmax.xlane.f32.xlu0 %v839_v48  ;;  %430 = vmax.xlane.f32.xlu1 %v429_v51  ;;  %v1233_v30 = vmul.f32 0.2, %v1225_v60  ;;  %v1227_v27 = vadd.f32 %v3185_v16, %v3083_v38  ;;  %v432_v8 = vsel %vm227_vm1, %v3211_v50, -inf  ;;  %vm1229_vm4 = vcmp.gt.f32.partialorder %v1225_v60, 0.0  ;;  %v1010_v51 = vpop.permute.xlu1 %1009 }
 0x1f3   :  { %v824_v9 = vmul.f32 0.2, %v816_v2  ;;  %v818_v10 = vadd.f32 %v3139_v26, %v806_v57  ;;  %vm820_vm5 = vcmp.gt.f32.partialorder %v816_v2, 0.0  ;;  %v1043_v11 = vsel %vm227_vm1, %v3218_v4, -inf }
 0x1f4   :  { %v3234_v14 = vadd.f32 %v3120_v61, %v1035_v5  ;;  %v3237_v17 = vadd.f32 %v3122_v62, %v626_v6  ;;  %v1630_v38 = vsub.s32 7, %v3089_v45  ;;  %v632_v33 = vsel %vm227_vm1, %v3221_v24, -inf }
 0x1f5   :  { %v1237_v25 = vsel %vm1229_vm4, %v1225_v60, %v1233_v30  ;;  %v1235_v26 = vmul.f32 0.2, %v1227_v27  ;;  %v1429_v28 = vadd.f32 %v3224_v36, %v3091_v46  ;;  %v828_v39 = vsel %vm820_vm5, %v816_v2, %v824_v9 }
 0x1f6   :  { %846 = vmax.xlane.f32.xlu0 %v845_v3  ;;  %433 = vmax.xlane.f32.xlu1 %v432_v8  ;;  %vm1231_vm6 = vcmp.gt.f32.partialorder %v1227_v27, 0.0  ;;  %v826_v29 = vmul.f32 0.2, %v818_v10  ;;  %v1020_v37 = vadd.f32 %v3149_v42, %v3073_v32  ;;  %vm822_vm7 = vcmp.gt.f32.partialorder %v818_v10, 0.0 }
 0x1f7   :  { %v1049_v41 = vsel %vm227_vm1, %v3234_v14, -inf  ;;  %v638_v44 = vsel %vm227_vm1, %v3237_v17, -inf  ;;  %v3251_v48 = vadd.f32 %v3106_v54, %v1237_v25  ;;  %v3254_v46 = vrot.slane %v3104_v53, %v1630_v38 }
 0x1f8   :  { %v3257_v55 = vadd.f32 %v3114_v58, %v828_v39  ;;  %v1239_v32 = vsel %vm1231_vm6, %v1227_v27, %v1235_v26  ;;  %vm1433_vm8 = vcmp.gt.f32.partialorder %v1429_v28, 0.0  ;;  %v1437_v57 = vmul.f32 0.2, %v1429_v28 }
 0x1f9   :  { %v830_v63 = vsel %vm822_vm7, %v818_v10, %v826_v29  ;;  %v1028_v34 = vmul.f32 0.2, %v1020_v37  ;;  %v1431_v1 = vadd.f32 %v3224_v36, %v3093_v47  ;;  %v1022_v60 = vadd.f32 %v3149_v42, %v1010_v51 }
 0x1fa   :  { %1044 = vmax.xlane.f32.xlu0 %v1043_v11  ;;  %633 = vmax.xlane.f32.xlu1 %v632_v33  ;;  %vm1024_vm9 = vcmp.gt.f32.partialorder %v1020_v37, 0.0  ;;  %v1247_v53 = vsel %vm227_vm1, %v3251_v48, -inf  ;;  %v836_v2 = vsel %vm227_vm1, %v3257_v55, -inf  ;;  %v3267_v3 = vadd.f32 %v3120_v61, %v1239_v32 }
 0x1fb   :  { %v3270_v5 = vadd.f32 %v3122_v62, %v830_v63  ;;  %v1441_v6 = vsel %vm1433_vm8, %v1429_v28, %v1437_v57  ;;  %v1032_v30 = vsel %vm1024_vm9, %v1020_v37, %v1028_v34  ;;  %v1439_v47 = vmul.f32 0.2, %v1431_v1 }
 0x1fc   :  { %v1030_v27 = vmul.f32 0.2, %v1022_v60  ;;  %v1633_v42 = vadd.f32 %v3254_v46, %v3180_v59  ;;  %vm1435_vm10 = vcmp.gt.f32.partialorder %v1431_v1, 0.0  ;;  %vm1026_vm11 = vcmp.gt.f32.partialorder %v1022_v60, 0.0  ;;  %v1214_v59 = vpop.permute.xlu1 %1213 }
 0x1fd   :  { %v1224_v8 = vadd.f32 %v3185_v16, %v3079_v35  ;;  %v1253_v9 = vsel %vm227_vm1, %v3267_v3, -inf  ;;  %v842_v10 = vsel %vm227_vm1, %v3270_v5, -inf  ;;  %v3281_v11 = vadd.f32 %v3106_v54, %v1441_v6 }
 0x1fe   :  { %1050 = vmax.xlane.f32.xlu0 %v1049_v41  ;;  %639 = vmax.xlane.f32.xlu1 %v638_v44  ;;  %v3284_v38 = vadd.f32 %v3114_v58, %v1032_v30  ;;  %v1443_v33 = vsel %vm1435_vm10, %v1431_v1, %v1439_v47  ;;  %v1034_v25 = vsel %vm1026_vm11, %v1022_v60, %v1030_v27  ;;  %v1641_v26 = vmul.f32 0.2, %v1633_v42 }
 0x1ff   :  { %v1635_v28 = vadd.f32 %v3254_v46, %v1626_v56  ;;  %vm1637_vm12 = vcmp.gt.f32.partialorder %v1633_v42, 0.0  ;;  %v1232_v35 = vmul.f32 0.2, %v1224_v8  ;;  %v1226_v39 = vadd.f32 %v3185_v16, %v1214_v59 }
 0x200   :  { %vm1228_vm13 = vcmp.gt.f32.partialorder %v1224_v8, 0.0  ;;  %v2938_v29 = vmov 1065369472   ;;  %v1451_v37 = vsel %vm227_vm1, %v3281_v11, -inf  ;;  %v1040_v41 = vsel %vm227_vm1, %v3284_v38, -inf  ;;  %v1418_v34 = vpop.permute.xlu1 %1417 }
 0x201   :  { %2564 = vmatprep.subr.bf16.mxu0 %v2938_v29  ;;  %v3295_v56 = vadd.f32 %v3120_v61, %v1443_v33  ;;  %v3298_v44 = vadd.f32 %v3122_v62, %v1034_v25  ;;  %v1645_v51 = vsel %vm1637_vm12, %v1633_v42, %v1641_v26  ;;  %v1236_v16 = vsel %vm1228_vm13, %v1224_v8, %v1232_v35 }
 0x202   :  { %1248 = vmax.xlane.f32.xlu0 %v1247_v53  ;;  %837 = vmax.xlane.f32.xlu1 %v836_v2  ;;  %v1643_v32 = vmul.f32 0.2, %v1635_v28  ;;  %v1234_v57 = vmul.f32 0.2, %v1226_v39  ;;  %v1428_v63 = vadd.f32 %v3224_v36, %v3087_v40  ;;  %vm1639_vm14 = vcmp.gt.f32.partialorder %v1635_v28, 0.0 }
 0x203   :  { %2565 = vmatpush3.bf16.msra.mxu0 %v2938_v29  ;;  %vm1230_vm15 = vcmp.gt.f32.partialorder %v1226_v39, 0.0  ;;  %v1457_v1 = vsel %vm227_vm1, %v3295_v56, -inf  ;;  %v1046_v60 = vsel %vm227_vm1, %v3298_v44, -inf  ;;  %v3309_v53 = vadd.f32 %v3106_v54, %v1645_v51 }
 0x204   :  { %2566 = vmatprep.subr.bf16.mxu0 %v2938_v29  ;;  %v3312_v2 = vadd.f32 %v3114_v58, %v1236_v16  ;;  %v1647_v40 = vsel %vm1639_vm14, %v1635_v28, %v1643_v32  ;;  %v1238_v6 = vsel %vm1230_vm15, %v1226_v39, %v1234_v57  ;;  %v1436_v30 = vmul.f32 0.2, %v1428_v63  ;;  %v1622_v33 = vpop.permute.xlu1 %1621 }
 0x205   :  { %v1430_v47 = vadd.f32 %v3224_v36, %v1418_v34  ;;  %vm1432_vm2 = vcmp.gt.f32.partialorder %v1428_v63, 0.0  ;;  %v1655_v27 = vsel %vm227_vm1, %v3309_v53, -inf  ;;  %v3321_v8 = vadd.f32 %v3120_v61, %v1647_v40 }
 0x206   :  { %1254 = vmax.xlane.f32.xlu0 %v1253_v9  ;;  %843 = vmax.xlane.f32.xlu1 %v842_v10  ;;  %v1244_v42 = vsel %vm227_vm1, %v3312_v2, -inf  ;;  %v3324_v9 = vadd.f32 %v3122_v62, %v1238_v6  ;;  %v1440_v10 = vsel %vm1432_vm2, %v1428_v63, %v1436_v30  ;;  %v1632_v36 = vadd.f32 %v3254_v46, %v3127_v12 }
 0x207   :  { %2567 = vmatpush3.bf16.msra.mxu0 %v2938_v29  ;;  %v1438_v59 = vmul.f32 0.2, %v1430_v47  ;;  %vm1434_vm3 = vcmp.gt.f32.partialorder %v1430_v47, 0.0  ;;  %v1661_v25 = vsel %vm227_vm1, %v3321_v8, -inf  ;;  %v3333_v28 = vadd.f32 %v3114_v58, %v1440_v10 }
 0x208   :  { %2580 = vmatprep.subr.bf16.mxu0 %v2938_v29  ;;  %v1250_v26 = vsel %vm227_vm1, %v3324_v9, -inf  ;;  %v1640_v39 = vmul.f32 0.2, %v1632_v36  ;;  %vm1636_vm4 = vcmp.gt.f32.partialorder %v1632_v36, 0.0  ;;  %vm1928_vm6 = vcmask 64512  }
 0x209   :  { %v1442_v35 = vsel %vm1434_vm3, %v1430_v47, %v1438_v59  ;;  %v1448_v12 = vsel %vm227_vm1, %v3333_v28, -inf  ;;  %vm1937_vm7 = vcmask 195584   ;;  %vm1946_vm8 = vcmask 326656  }
 0x20a   :  { %1452 = vmax.xlane.f32.xlu0 %v1451_v37  ;;  %1041 = vmax.xlane.f32.xlu1 %v1040_v41  ;;  %v1634_v37 = vadd.f32 %v3254_v46, %v1622_v33  ;;  %v3339_v41 = vadd.f32 %v3122_v62, %v1442_v35  ;;  %v1644_v51 = vsel %vm1636_vm4, %v1632_v36, %v1640_v39  ;;  %vm1956_vm9 = vcmask 457728  }
 0x20b   :  { %v3344_v57 = vadd.f32 %v3114_v58, %v1644_v51  ;;  %vm1951_vm10 = vcmask 392192  }
 0x20c   :  { %v1642_v16 = vmul.f32 0.2, %v1634_v37  ;;  %vm1638_vm5 = vcmp.gt.f32.partialorder %v1634_v37, 0.0  ;;  %v1454_v32 = vsel %vm227_vm1, %v3339_v41, -inf }
 0x20d   :  { %v1652_v46 = vsel %vm227_vm1, %v3344_v57, -inf }
 0x20e   :  { %1458 = vmax.xlane.f32.xlu0 %v1457_v1  ;;  %1047 = vmax.xlane.f32.xlu1 %v1046_v60  ;;  %v1646_v63 = vsel %vm1638_vm5, %v1634_v37, %v1642_v16 }
 0x20f   :  { %v3349_v34 = vadd.f32 %v3122_v62, %v1646_v63 }
 0x211   :  { %v1658_v1 = vsel %vm227_vm1, %v3349_v34, -inf }
 0x212   :  { %1656 = vmax.xlane.f32.xlu0 %v1655_v27  ;;  %1245 = vmax.xlane.f32.xlu1 %v1244_v42 }
 0x216   :  { %1662 = vmax.xlane.f32.xlu0 %v1661_v25  ;;  %1251 = vmax.xlane.f32.xlu1 %v1250_v26 }
 0x21a   :  { %1449 = vmax.xlane.f32.xlu1 %v1448_v12 }
 0x21e   :  { %1455 = vmax.xlane.f32.xlu1 %v1454_v32 }
 0x222   :  { %1653 = vmax.xlane.f32.xlu1 %v1652_v46 }
 0x226   :  { %1659 = vmax.xlane.f32.xlu1 %v1658_v1 }
 0x22c   :  { %454 = vrot.lane.b32.xlu0 %v3031_v15, %s2939_s1 }
 0x230   :  { %864 = vrot.lane.b32.xlu0 %v3027_v13, %s2940_s12 }
 0x234   :  { %1068 = vrot.lane.b32.xlu0 %v3027_v13, %s2941_s13 }
 0x237   :  { %456 = vrot.lane.b32.xlu1 %v3027_v13, %s2939_s1 }
 0x238   :  { %1272 = vrot.lane.b32.xlu0 %v3027_v13, %s2942_s14 }
 0x23b   :  { %660 = vrot.lane.b32.xlu1 %v3027_v13, %s2943_s15 }
 0x23c   :  { %1476 = vrot.lane.b32.xlu0 %v3027_v13, %s2944_s16 }
 0x23f   :  { %658 = vrot.lane.b32.xlu1 %v3031_v15, %s2943_s15 }
 0x240   :  { %1680 = vrot.lane.b32.xlu0 %v3027_v13, %s2945_s17 }
 0x243   :  { %862 = vrot.lane.b32.xlu1 %v3031_v15, %s2940_s12 }
 0x247   :  { %1066 = vrot.lane.b32.xlu1 %v3031_v15, %s2941_s13 }
 0x24b   :  { %1270 = vrot.lane.b32.xlu1 %v3031_v15, %s2942_s14 }
 0x24f   :  { %1474 = vrot.lane.b32.xlu1 %v3031_v15, %s2944_s16 }
 0x253   :  { %1678 = vrot.lane.b32.xlu1 %v3031_v15, %s2945_s17 }
 0x26b   :  { %v233_v60 = vpop.xlane.xlu0 %232  ;;  %v230_v40 = vpop.xlane.xlu1 %229 }
 0x26c   :  { %v241_v6 = vsub.f32 %v3130_v18, %v233_v60  ;;  %v240_v30 = vsub.f32 %v3133_v19, %v230_v40 }
 0x26e   :  { %v246_v47 = vmul.f32 1.442695, %v241_v6  ;;  %v244_v27 = vmul.f32 1.442695, %v240_v30 }
 0x26f   :  { %v437_v42 = vpop.xlane.xlu0 %436  ;;  %v236_v13 = vpop.xlane.xlu1 %235 }
 0x270   :  { %2761 = vpow2.f32 %v246_v47  ;;  %v242_v10 = vsub.f32 %v3146_v31, %v236_v13  ;;  %v441_v37 = vsub.f32 %v3136_v23, %v437_v42 }
 0x271   :  { %2763 = vpow2.f32 %v244_v27 }
 0x272   :  { %v248_v33 = vmul.f32 1.442695, %v242_v10  ;;  %v448_v1 = vmul.f32 1.442695, %v441_v37 }
 0x273   :  { %v637_v59 = vpop.xlane.xlu0 %636  ;;  %v239_v36 = vpop.xlane.xlu1 %238 }
 0x274   :  { %v243_v25 = vsub.f32 %v3162_v0, %v239_v36  ;;  %2765 = vpow2.f32 %v248_v33  ;;  %v645_v60 = vsub.f32 %v3152_v43, %v637_v59 }
 0x276   :  { %v250_v15 = vmul.f32 1.442695, %v243_v25  ;;  %v650_v6 = vmul.f32 1.442695, %v645_v60 }
 0x277   :  { %v643_v26 = vpop.xlane.xlu0 %642  ;;  %v428_v35 = vpop.xlane.xlu1 %427 }
 0x278   :  { %v438_v18 = vsub.f32 %v3174_v7, %v428_v35  ;;  %2767 = vpow2.f32 %v250_v15  ;;  %v647_v30 = vsub.f32 %v3169_v22, %v643_v26 }
 0x27a   :  { %v442_v12 = vmul.f32 1.442695, %v438_v18  ;;  %v654_v59 = vmul.f32 1.442695, %v647_v30 }
 0x27b   :  { %v841_v19 = vpop.xlane.xlu0 %840  ;;  %v431_v39 = vpop.xlane.xlu1 %430 }
 0x27c   :  { %v439_v31 = vsub.f32 %v3193_v21, %v431_v39  ;;  %2769 = vpow2.f32 %v442_v12  ;;  %v849_v36 = vsub.f32 %v3190_v20, %v841_v19 }
 0x27d   :  { %v2762_v51 = vpop.eup %2761 }
 0x27e   :  { %v2764_v16 = vpop.eup %2763  ;;  %v444_v32 = vmul.f32 1.442695, %v439_v31  ;;  %v854_v15 = vmul.f32 1.442695, %v849_v36 }
 0x27f   :  { %v847_v63 = vpop.xlane.xlu0 %846  ;;  %v434_v46 = vpop.xlane.xlu1 %433  ;;  %v252_v0 = vpack.c.bf16 %v2762_v51, %v2764_v16 }
 0x280   :  { %v440_v7 = vsub.f32 %v3211_v50, %v434_v46  ;;  %2771 = vpow2.f32 %v444_v32  ;;  %v851_v26 = vsub.f32 %v3206_v52, %v847_v63 }
 0x281   :  { %2560 = vmatprep.mubr.msk.bf16.mxu1 %vm227_vm1, %v252_v0  ;;  %2568 = vmatprep.mubr.msk.bf16.mxu0 %vm227_vm1, %v252_v0  ;;  %2773 = vpow2.f32 %v448_v1  ;;  %v2766_v27 = vpop.eup %2765 }
 0x282   :  { %v446_v23 = vmul.f32 1.442695, %v440_v7  ;;  %v858_v37 = vmul.f32 1.442695, %v851_v26 }
 0x283   :  { %v1045_v40 = vpop.xlane.xlu0 %1044  ;;  %v634_v21 = vpop.xlane.xlu1 %633 }
 0x284   :  { %v644_v47 = vsub.f32 %v3221_v24, %v634_v21  ;;  %2775 = vpow2.f32 %v446_v23  ;;  %v1053_v12 = vsub.f32 %v3218_v4, %v1045_v40 }
 0x285   :  { %v2768_v43 = vpop.eup %2767  ;;  %2777 = vpow2.f32 %v650_v6 }
 0x286   :  { %v648_v42 = vmul.f32 1.442695, %v644_v47  ;;  %v253_v10 = vpack.c.bf16 %v2768_v43, %v2766_v27  ;;  %v1058_v46 = vmul.f32 1.442695, %v1053_v12 }
 0x287   :  { %v1051_v13 = vpop.xlane.xlu0 %1050  ;;  %v640_v50 = vpop.xlane.xlu1 %639 }
 0x288   :  { %v646_v33 = vsub.f32 %v3237_v17, %v640_v50  ;;  %2779 = vpow2.f32 %v648_v42  ;;  %2561 = vmatmul.mubr.msk.bf16.vlgmr.msra.gmra.mxu1 %vm227_vm1, %v253_v10  ;;  %2569 = vmatmul.mubr.msk.bf16.vlgmr.msra.gmra.mxu0 %vm227_vm1, %v253_v10  ;;  %v1055_v0 = vsub.f32 %v3234_v14, %v1051_v13 }
 0x289   :  { %2581 = vmatpush3.bf16.msra.mxu0 %v2938_v29  ;;  %2781 = vpow2.f32 %v654_v59  ;;  %v2770_v35 = vpop.eup %2769 }
 0x28a   :  { %v652_v22 = vmul.f32 1.442695, %v646_v33  ;;  %2582 = vmatprep.subr.bf16.mxu0 %v2938_v29  ;;  %v1062_v21 = vmul.f32 1.442695, %v1055_v0 }
 0x28b   :  { %v1249_v24 = vpop.xlane.xlu0 %1248  ;;  %v838_v25 = vpop.xlane.xlu1 %837 }
 0x28c   :  { %v848_v20 = vsub.f32 %v3257_v55, %v838_v25  ;;  %2783 = vpow2.f32 %v652_v22  ;;  %v1257_v14 = vsub.f32 %v3251_v48, %v1249_v24 }
 0x28d   :  { %v2772_v17 = vpop.eup %2771  ;;  %2583 = vmatpush3.bf16.msra.mxu0 %v2938_v29  ;;  %2785 = vpow2.f32 %v854_v15 }
 0x28e   :  { %v852_v18 = vmul.f32 1.442695, %v848_v20  ;;  %v450_v39 = vpack.c.bf16 %v2772_v17, %v2770_v35  ;;  %2596 = vmatprep.subr.bf16.mxu0 %v2938_v29  ;;  %v2774_v52 = vpop.eup %2773  ;;  %v1262_v42 = vmul.f32 1.442695, %v1257_v14 }
 0x28f   :  { %v844_v19 = vpop.xlane.xlu1 %843  ;;  %v1255_v31 = vpop.xlane.xlu0 %1254 }
 0x290   :  { %v850_v51 = vsub.f32 %v3270_v5, %v844_v19  ;;  %2787 = vpow2.f32 %v852_v18  ;;  %2576 = vmatprep.mubr.msk.bf16.mxu1 %vm227_vm1, %v450_v39  ;;  %2584 = vmatprep.mubr.msk.bf16.mxu0 %vm227_vm1, %v450_v39  ;;  %v1259_v48 = vsub.f32 %v3267_v3, %v1255_v31 }
 0x291   :  { %v2776_v55 = vpop.eup %2775  ;;  %2789 = vpow2.f32 %v858_v37 }
 0x292   :  { %v856_v16 = vmul.f32 1.442695, %v850_v51  ;;  %v3394_v63 = vpack.c.bf16 %v2774_v52, %v2776_v55  ;;  %v2778_v1 = vpop.eup %2777  ;;  %v1266_v3 = vmul.f32 1.442695, %v1259_v48 }
 0x293   :  { %v1042_v32 = vpop.xlane.xlu1 %1041  ;;  %v1453_v60 = vpop.xlane.xlu0 %1452 }
 0x294   :  { %v1052_v4 = vsub.f32 %v3284_v38, %v1042_v32  ;;  %2791 = vpow2.f32 %v856_v16  ;;  %2585 = vmatmul.mubr.msk.bf16.vlgmr.msra.gmra.mxu0 %vm227_vm1, %v3394_v63  ;;  %v1461_v36 = vsub.f32 %v3281_v11, %v1453_v60 }
 0x295   :  { %v2780_v5 = vpop.eup %2779  ;;  %2597 = vmatpush3.bf16.msra.mxu0 %v2938_v29  ;;  %2793 = vpow2.f32 %v1058_v46 }
 0x296   :  { %v1056_v7 = vmul.f32 1.442695, %v1052_v4  ;;  %2598 = vmatprep.subr.bf16.mxu0 %v2938_v29  ;;  %v3402_v40 = vpack.c.bf16 %v2778_v1, %v2780_v5  ;;  %v2782_v6 = vpop.eup %2781  ;;  %v1466_v11 = vmul.f32 1.442695, %v1461_v36 }
 0x297   :  { %v1048_v23 = vpop.xlane.xlu1 %1047  ;;  %v1459_v13 = vpop.xlane.xlu0 %1458 }
 0x298   :  { %v1054_v38 = vsub.f32 %v3298_v44, %v1048_v23  ;;  %2795 = vpow2.f32 %v1056_v7  ;;  %2600 = vmatprep.mubr.msk.bf16.mxu0 %vm227_vm1, %v3402_v40  ;;  %v1463_v20 = vsub.f32 %v3295_v56, %v1459_v13 }
 0x299   :  { %v2784_v30 = vpop.eup %2783  ;;  %2599 = vmatpush3.bf16.msra.mxu0 %v2938_v29  ;;  %2797 = vpow2.f32 %v1062_v21 }
 0x29a   :  { %v1060_v47 = vmul.f32 1.442695, %v1054_v38  ;;  %v3409_v43 = vpack.c.bf16 %v2782_v6, %v2784_v30  ;;  %2612 = vmatprep.subr.bf16.mxu0 %v2938_v29  ;;  %v2786_v50 = vpop.eup %2785  ;;  %v1470_v37 = vmul.f32 1.442695, %v1463_v20  ;;  %v2946_v20 = vmov 0  }
 0x29b   :  { %v1246_v27 = vpop.xlane.xlu1 %1245  ;;  %v1657_v15 = vpop.xlane.xlu0 %1656  ;;  %2755 = vset.pattern.permute.xlu0 %v2946_v20  ;;  %2756 = vset.pattern.permute.xlu1 %v2946_v20 }
 0x29c   :  { %v1256_v44 = vsub.f32 %v3312_v2, %v1246_v27  ;;  %2799 = vpow2.f32 %v1060_v47  ;;  %2601 = vmatmul.mubr.msk.bf16.vlgmr.msra.gmra.mxu0 %vm227_vm1, %v3409_v43  ;;  %v1665_v56 = vsub.f32 %v3309_v53, %v1657_v15 }
 0x29d   :  { %v2788_v10 = vpop.eup %2787  ;;  %2613 = vmatpush3.bf16.msra.mxu0 %v2938_v29  ;;  %2801 = vpow2.f32 %v1262_v42 }
 0x29e   :  { %v1260_v59 = vmul.f32 1.442695, %v1256_v44  ;;  %2614 = vmatprep.subr.bf16.mxu0 %v2938_v29  ;;  %v3419_v22 = vpack.c.bf16 %v2786_v50, %v2788_v10  ;;  %v2790_v24 = vpop.eup %2789  ;;  %v1670_v32 = vmul.f32 1.442695, %v1665_v56 }
 0x29f   :  { %v1252_v33 = vpop.xlane.xlu1 %1251  ;;  %v1663_v51 = vpop.xlane.xlu0 %1662 }
 0x2a0   :  { %v1258_v2 = vsub.f32 %v3324_v9, %v1252_v33  ;;  %2803 = vpow2.f32 %v1260_v59  ;;  %2616 = vmatprep.mubr.msk.bf16.mxu0 %vm227_vm1, %v3419_v22  ;;  %v1667_v53 = vsub.f32 %v3321_v8, %v1663_v51 }
 0x2a1   :  { %v2792_v25 = vpop.eup %2791  ;;  %2615 = vmatpush3.bf16.msra.mxu0 %v2938_v29  ;;  %2805 = vpow2.f32 %v1266_v3 }
 0x2a2   :  { %v1264_v26 = vmul.f32 1.442695, %v1258_v2  ;;  %v3426_v17 = vpack.c.bf16 %v2790_v24, %v2792_v25  ;;  %2628 = vmatprep.subr.bf16.mxu0 %v2938_v29  ;;  %v2794_v18 = vpop.eup %2793  ;;  %v1674_v60 = vmul.f32 1.442695, %v1667_v53 }
 0x2a3   :  { %v1450_v35 = vpop.xlane.xlu1 %1449  ;;  %v455_v27 = vpop.permute.xlu0 %454 }
 0x2a4   :  { %v1460_v9 = vsub.f32 %v3333_v28, %v1450_v35  ;;  %2807 = vpow2.f32 %v1264_v26  ;;  %2617 = vmatmul.mubr.msk.bf16.vlgmr.msra.gmra.mxu0 %vm227_vm1, %v3426_v17 }
 0x2a5   :  { %v2796_v19 = vpop.eup %2795  ;;  %2629 = vmatpush3.bf16.msra.mxu0 %v2938_v29  ;;  %2809 = vpow2.f32 %v1466_v11 }
 0x2a6   :  { %v1464_v39 = vmul.f32 1.442695, %v1460_v9  ;;  %2630 = vmatprep.subr.bf16.mxu0 %v2938_v29  ;;  %v3435_v31 = vpack.c.bf16 %v2794_v18, %v2796_v19  ;;  %v2798_v52 = vpop.eup %2797 }
 0x2a7   :  { %v1456_v12 = vpop.xlane.xlu1 %1455  ;;  %v865_v2 = vpop.permute.xlu0 %864 }
 0x2a8   :  { %2811 = vpow2.f32 %v1464_v39  ;;  %v1462_v28 = vsub.f32 %v3339_v41, %v1456_v12  ;;  %2632 = vmatprep.mubr.msk.bf16.mxu0 %vm227_vm1, %v3435_v31 }
 0x2a9   :  { %v2800_v55 = vpop.eup %2799  ;;  %2631 = vmatpush3.bf16.msra.mxu0 %v2938_v29  ;;  %2813 = vpow2.f32 %v1470_v37 }
 0x2aa   :  { %v1468_v16 = vmul.f32 1.442695, %v1462_v28  ;;  %v3442_v0 = vpack.c.bf16 %v2798_v52, %v2800_v55  ;;  %2644 = vmatprep.subr.bf16.mxu0 %v2938_v29  ;;  %v2802_v4 = vpop.eup %2801 }
 0x2ab   :  { %v1654_v46 = vpop.xlane.xlu1 %1653  ;;  %v1069_v24 = vpop.permute.xlu0 %1068 }
 0x2ac   :  { %2815 = vpow2.f32 %v1468_v16  ;;  %v1664_v41 = vsub.f32 %v3344_v57, %v1654_v46  ;;  %2633 = vmatmul.mubr.msk.bf16.vlgmr.msra.gmra.mxu0 %vm227_vm1, %v3442_v0 }
 0x2ad   :  { %v2804_v1 = vpop.eup %2803  ;;  %2645 = vmatpush3.bf16.msra.mxu0 %v2938_v29  ;;  %2817 = vpow2.f32 %v1670_v32 }
 0x2ae   :  { %v1668_v5 = vmul.f32 1.442695, %v1664_v41  ;;  %2646 = vmatprep.subr.bf16.mxu0 %v2938_v29  ;;  %v3450_v8 = vpack.c.bf16 %v2802_v4, %v2804_v1  ;;  %v2806_v21 = vpop.eup %2805 }
 0x2af   :  { %v1660_v7 = vpop.xlane.xlu1 %1659 }
 0x2b0   :  { %2819 = vpow2.f32 %v1668_v5  ;;  %v1666_v23 = vsub.f32 %v3349_v34, %v1660_v7  ;;  %2648 = vmatprep.mubr.msk.bf16.mxu0 %vm227_vm1, %v3450_v8 }
 0x2b1   :  { %v2808_v57 = vpop.eup %2807  ;;  %2647 = vmatpush3.bf16.msra.mxu0 %v2938_v29  ;;  %2821 = vpow2.f32 %v1674_v60 }
 0x2b2   :  { %v1672_v14 = vmul.f32 1.442695, %v1666_v23  ;;  %v3456_v6 = vpack.c.bf16 %v2806_v21, %v2808_v57  ;;  %2660 = vmatprep.subr.bf16.mxu0 %v2938_v29  ;;  %v2810_v30 = vpop.eup %2809 }
 0x2b3   :  { %v457_v38 = vpop.permute.xlu1 %456 }
 0x2b4   :  { %2823 = vpow2.f32 %v1672_v14  ;;  %2572 = vmatprep.subr.bf16.mxu1 %v457_v38  ;;  %2649 = vmatmul.mubr.msk.bf16.vlgmr.msra.gmra.mxu0 %vm227_vm1, %v3456_v6 }
 0x2b5   :  { %v2812_v47 = vpop.eup %2811  ;;  %2573 = vmatpush3.bf16.msra.mxu1 %v457_v38  ;;  %2661 = vmatpush3.bf16.msra.mxu0 %v2938_v29 }
 0x2b6   :  { %2574 = vmatprep.subr.bf16.mxu1 %v455_v27  ;;  %v1472_v34 = vpack.c.bf16 %v2810_v30, %v2812_v47  ;;  %2662 = vmatprep.subr.bf16.mxu0 %v2938_v29  ;;  %v2814_v42 = vpop.eup %2813 }
 0x2b7   :  { %v661_v48 = vpop.permute.xlu1 %660 }
 0x2b8   :  { %2664 = vmatprep.mubr.msk.bf16.mxu0 %vm227_vm1, %v1472_v34 }
 0x2b9   :  { %v2816_v13 = vpop.eup %2815  ;;  %2575 = vmatpush3.bf16.msra.mxu1 %v455_v27  ;;  %2663 = vmatpush3.bf16.msra.mxu0 %v2938_v29 }
 0x2ba   :  { %2588 = vmatprep.subr.bf16.mxu1 %v661_v48  ;;  %v1473_v44 = vpack.c.bf16 %v2814_v42, %v2816_v13  ;;  %2676 = vmatprep.subr.bf16.mxu0 %v2938_v29  ;;  %v2818_v50 = vpop.eup %2817 }
 0x2bb   :  { %v659_v59 = vpop.permute.xlu1 %658 }
 0x2bc   :  { %2577 = vmatmul.mubr.msk.bf16.vlgmr.msra.gmra.mxu1 %vm227_vm1, %v3394_v63  ;;  %2665 = vmatmul.mubr.msk.bf16.vlgmr.msra.gmra.mxu0 %vm227_vm1, %v1473_v44 }
 0x2bd   :  { %v2820_v10 = vpop.eup %2819  ;;  %2589 = vmatpush3.bf16.msra.mxu1 %v661_v48  ;;  %2592 = vmatprep.mubr.msk.bf16.mxu1 %vm227_vm1, %v3402_v40 }
 0x2be   :  { %2677 = vmatpush3.bf16.msra.mxu0 %v2938_v29  ;;  %v1676_v36 = vpack.c.bf16 %v2818_v50, %v2820_v10  ;;  %2590 = vmatprep.subr.bf16.mxu1 %v659_v59  ;;  %v2822_v33 = vpop.eup %2821 }
 0x2bf   :  { %2678 = vmatprep.subr.bf16.mxu0 %v2938_v29  ;;  %v863_v40 = vpop.permute.xlu1 %862 }
 0x2c0   :  { %2680 = vmatprep.mubr.msk.bf16.mxu0 %vm227_vm1, %v1676_v36 }
 0x2c1   :  { %v2824_v3 = vpop.eup %2823  ;;  %2591 = vmatpush3.bf16.msra.mxu1 %v659_v59 }
 0x2c2   :  { %2679 = vmatpush3.bf16.msra.mxu0 %v2938_v29  ;;  %2604 = vmatprep.subr.bf16.mxu1 %v865_v2  ;;  %v1677_v63 = vpack.c.bf16 %v2822_v33, %v2824_v3 }
 0x2c3   :  { %v1067_v25 = vpop.permute.xlu1 %1066 }
 0x2c4   :  { %2593 = vmatmul.mubr.msk.bf16.vlgmr.msra.gmra.mxu1 %vm227_vm1, %v3409_v43  ;;  %v1273_v43 = vpop.permute.xlu0 %1272 }
 0x2c5   :  { %2681 = vmatmul.mubr.msk.bf16.vlgmr.msra.gmra.mxu0 %vm227_vm1, %v1677_v63  ;;  %2605 = vmatpush3.bf16.msra.mxu1 %v865_v2 }
 0x2c6   :  { %2608 = vmatprep.mubr.msk.bf16.mxu1 %vm227_vm1, %v3419_v22  ;;  %2606 = vmatprep.subr.bf16.mxu1 %v863_v40 }
 0x2c7   :  { %v1271_v22 = vpop.permute.xlu1 %1270 }
 0x2c8   :  { %v1477_v15 = vpop.permute.xlu0 %1476 }
 0x2c9   :  { %2607 = vmatpush3.bf16.msra.mxu1 %v863_v40 }
 0x2ca   :  { %2620 = vmatprep.subr.bf16.mxu1 %v1069_v24 }
 0x2cb   :  { %v1475_v26 = vpop.permute.xlu1 %1474 }
 0x2cc   :  { %2609 = vmatmul.mubr.msk.bf16.vlgmr.msra.gmra.mxu1 %vm227_vm1, %v3426_v17  ;;  %v1681_v11 = vpop.permute.xlu0 %1680 }
 0x2cd   :  { %2621 = vmatpush3.bf16.msra.mxu1 %v1069_v24  ;;  %2624 = vmatprep.mubr.msk.bf16.mxu1 %vm227_vm1, %v3435_v31 }
 0x2ce   :  { %2622 = vmatprep.subr.bf16.mxu1 %v1067_v25 }
 0x2cf   :  { %v1679_v35 = vpop.permute.xlu1 %1678 }
 0x2d1   :  { %2623 = vmatpush3.bf16.msra.mxu1 %v1067_v25 }
 0x2d2   :  { %2636 = vmatprep.subr.bf16.mxu1 %v1273_v43 }
 0x2d4   :  { %2625 = vmatmul.mubr.msk.bf16.vlgmr.msra.gmra.mxu1 %vm227_vm1, %v3442_v0 }
 0x2d5   :  { %2637 = vmatpush3.bf16.msra.mxu1 %v1273_v43  ;;  %2640 = vmatprep.mubr.msk.bf16.mxu1 %vm227_vm1, %v3450_v8 }
 0x2d6   :  { %2638 = vmatprep.subr.bf16.mxu1 %v1271_v22 }
 0x2d9   :  { %2639 = vmatpush3.bf16.msra.mxu1 %v1271_v22 }
 0x2da   :  { %2652 = vmatprep.subr.bf16.mxu1 %v1477_v15 }
 0x2dc   :  { %2641 = vmatmul.mubr.msk.bf16.vlgmr.msra.gmra.mxu1 %vm227_vm1, %v3456_v6 }
 0x2dd   :  { %2653 = vmatpush3.bf16.msra.mxu1 %v1477_v15  ;;  %2656 = vmatprep.mubr.msk.bf16.mxu1 %vm227_vm1, %v1472_v34 }
 0x2de   :  { %2654 = vmatprep.subr.bf16.mxu1 %v1475_v26 }
 0x2e1   :  { %2655 = vmatpush3.bf16.msra.mxu1 %v1475_v26 }
 0x2e2   :  { %2668 = vmatprep.subr.bf16.mxu1 %v1681_v11 }
 0x2e4   :  { %2657 = vmatmul.mubr.msk.bf16.vlgmr.msra.gmra.mxu1 %vm227_vm1, %v1473_v44 }
 0x2e5   :  { %2669 = vmatpush3.bf16.msra.mxu1 %v1681_v11  ;;  %2672 = vmatprep.mubr.msk.bf16.mxu1 %vm227_vm1, %v1676_v36 }
 0x2e6   :  { %2670 = vmatprep.subr.bf16.mxu1 %v1679_v35 }
 0x2e9   :  { %2671 = vmatpush3.bf16.msra.mxu1 %v1679_v35 }
 0x2ec   :  { %2673 = vmatmul.mubr.msk.bf16.vlgmr.msra.gmra.mxu1 %vm227_vm1, %v1677_v63 }
 0x348   :  { %v3496_v17 = vpop.f32.mrf.mxu0 }
 0x34a   :  { %v3498_v9 = vpop.f32.mrf.mxu0 }
 0x34c   :  { %v3500_v18 = vpop.f32.mrf.mxu0 }
 0x34e   :  { %v3502_v19 = vpop.f32.mrf.mxu0 }
 0x354   :  { %v2586_v39 = vpop.f32.mrf.mxu0 }
 0x355   :  { %2825 = vrcp.f32 %v2586_v39 }
 0x356   :  { %v549_v37 = vpop.f32.mrf.mxu0 }
 0x357   :  { %2827 = vrcp.f32 %v549_v37  ;;  %v3506_v37 = vpop.f32.mrf.mxu1 }
 0x358   :  { %v2587_v56 = vpop.f32.mrf.mxu0 }
 0x359   :  { %2829 = vrcp.f32 %v2587_v56 }
 0x35a   :  { %v552_v12 = vpop.f32.mrf.mxu0 }
 0x35b   :  { %2831 = vrcp.f32 %v552_v12 }
 0x35c   :  { %v2602_v31 = vpop.f32.mrf.mxu0 }
 0x35d   :  { %2833 = vrcp.f32 %v2602_v31  ;;  %v3509_v31 = vpop.f32.mrf.mxu1 }
 0x35e   :  { %v753_v51 = vpop.f32.mrf.mxu0 }
 0x35f   :  { %2835 = vrcp.f32 %v753_v51  ;;  %v3512_v51 = vpop.f32.mrf.mxu1 }
 0x360   :  { %v2603_v28 = vpop.f32.mrf.mxu0 }
 0x361   :  { %2837 = vrcp.f32 %v2603_v28 }
 0x362   :  { %v2826_v52 = vpop.eup %2825  ;;  %v756_v55 = vpop.f32.mrf.mxu0 }
 0x363   :  { %580 = vperm.xlu0 %2755, %v2826_v52   ;;  %v3514_v52 = vpop.f32.mrf.mxu1 }
 0x364   :  { %v2618_v16 = vpop.f32.mrf.mxu0  ;;  %v2828_v32 = vpop.eup %2827 }
 0x365   :  { %2839 = vrcp.f32 %v2618_v16 }
 0x366   :  { %v2830_v53 = vpop.eup %2829  ;;  %v957_v46 = vpop.f32.mrf.mxu0  ;;  %2841 = vrcp.f32 %v756_v55 }
 0x367   :  { %570 = vperm.xlu0 %2755, %v2828_v32   ;;  %585 = vperm.xlu1 %2756, %v2830_v53   ;;  %2843 = vrcp.f32 %v957_v46 }
 0x368   :  { %v2619_v0 = vpop.f32.mrf.mxu0  ;;  %v2832_v41 = vpop.eup %2831 }
 0x36a   :  { %v2834_v4 = vpop.eup %2833  ;;  %v960_v1 = vpop.f32.mrf.mxu0 }
 0x36b   :  { %784 = vperm.xlu0 %2755, %v2834_v4   ;;  %575 = vperm.xlu1 %2756, %v2832_v41  }
 0x36c   :  { %v2634_v5 = vpop.f32.mrf.mxu0  ;;  %v2836_v60 = vpop.eup %2835 }
 0x36d   :  { %2845 = vrcp.f32 %v2634_v5 }
 0x36e   :  { %v1161_v7 = vpop.f32.mrf.mxu0  ;;  %2847 = vrcp.f32 %v2619_v0  ;;  %v2838_v23 = vpop.eup %2837 }
 0x36f   :  { %774 = vperm.xlu1 %2756, %v2836_v60   ;;  %2849 = vrcp.f32 %v1161_v7 }
 0x370   :  { %v2635_v8 = vpop.f32.mrf.mxu0  ;;  %2851 = vrcp.f32 %v960_v1 }
 0x372   :  { %v2840_v21 = vpop.eup %2839  ;;  %v1164_v57 = vpop.f32.mrf.mxu0 }
 0x373   :  { %988 = vperm.xlu0 %2755, %v2840_v21   ;;  %789 = vperm.xlu1 %2756, %v2838_v23   ;;  %v2842_v38 = vpop.eup %2841 }
 0x374   :  { %v2650_v14 = vpop.f32.mrf.mxu0  ;;  %v2844_v47 = vpop.eup %2843 }
 0x375   :  { %2853 = vrcp.f32 %v2650_v14 }
 0x376   :  { %v1365_v6 = vpop.f32.mrf.mxu0  ;;  %2855 = vrcp.f32 %v1164_v57 }
 0x377   :  { %779 = vperm.xlu1 %2756, %v2842_v38   ;;  %2857 = vrcp.f32 %v1365_v6 }
 0x378   :  { %v2651_v30 = vpop.f32.mrf.mxu0 }
 0x37a   :  { %v2846_v27 = vpop.eup %2845  ;;  %v1368_v34 = vpop.f32.mrf.mxu0 }
 0x37b   :  { %1192 = vperm.xlu0 %2755, %v2846_v27   ;;  %978 = vperm.xlu1 %2756, %v2844_v47   ;;  %2859 = vrcp.f32 %v1368_v34  ;;  %v2848_v48 = vpop.eup %2847 }
 0x37c   :  { %v2666_v42 = vpop.f32.mrf.mxu0  ;;  %v2850_v13 = vpop.eup %2849 }
 0x37d   :  { %2861 = vrcp.f32 %v2666_v42  ;;  %v2852_v10 = vpop.eup %2851  ;;  %v2578_v55 = vpop.f32.mrf.mxu1 }
 0x37e   :  { %v1569_v44 = vpop.f32.mrf.mxu0 }
 0x37f   :  { %1182 = vperm.xlu0 %2755, %v2850_v13   ;;  %993 = vperm.xlu1 %2756, %v2848_v48   ;;  %2863 = vrcp.f32 %v1569_v44  ;;  %v500_v32 = vpop.f32.mrf.mxu1 }
 0x380   :  { %v2667_v50 = vpop.f32.mrf.mxu0 }
 0x381   :  { %v2579_v53 = vpop.f32.mrf.mxu1 }
 0x382   :  { %v2854_v59 = vpop.eup %2853  ;;  %v1572_v36 = vpop.f32.mrf.mxu0 }
 0x383   :  { %2865 = vrcp.f32 %v1572_v36  ;;  %1396 = vperm.xlu0 %2755, %v2854_v59   ;;  %983 = vperm.xlu1 %2756, %v2852_v10   ;;  %v2856_v3 = vpop.eup %2855  ;;  %v503_v46 = vpop.f32.mrf.mxu1 }
 0x384   :  { %v2858_v2 = vpop.eup %2857 }
 0x385   :  { %v2682_v33 = vpop.f32.mrf.mxu0 }
 0x387   :  { %v1773_v63 = vpop.f32.mrf.mxu0  ;;  %1386 = vperm.xlu0 %2755, %v2858_v2   ;;  %1187 = vperm.xlu1 %2756, %v2856_v3  }
 0x388   :  { %2867 = vrcp.f32 %v1773_v63  ;;  %v2860_v24 = vpop.eup %2859 }
 0x389   :  { %v2683_v40 = vpop.f32.mrf.mxu0  ;;  %2869 = vrcp.f32 %v2682_v33 }
 0x38a   :  { %v2862_v25 = vpop.eup %2861 }
 0x38b   :  { %v1776_v43 = vpop.f32.mrf.mxu0  ;;  %1600 = vperm.xlu0 %2755, %v2862_v25   ;;  %1391 = vperm.xlu1 %2756, %v2860_v24  }
 0x38c   :  { %2871 = vrcp.f32 %v1776_v43  ;;  %v2864_v22 = vpop.eup %2863 }
 0x38d   :  { %2873 = vrcp.f32 %v2635_v8 }
 0x38e   :  { %2875 = vrcp.f32 %v2651_v30 }
 0x38f   :  { %1590 = vperm.xlu0 %2755, %v2864_v22   ;;  %2877 = vrcp.f32 %v2667_v50 }
 0x390   :  { %v2866_v15 = vpop.eup %2865  ;;  %2879 = vrcp.f32 %v2683_v40 }
 0x391   :  { %1595 = vperm.xlu1 %2756, %v2866_v15   ;;  %2881 = vrcp.f32 %v3498_v9 }
 0x392   :  { %2883 = vrcp.f32 %v3502_v19 }
 0x393   :  { %2885 = vrcp.f32 %v3496_v17 }
 0x394   :  { %2887 = vrcp.f32 %v3500_v18  ;;  %v2594_v18 = vpop.f32.mrf.mxu1 }
 0x395   :  { %v2868_v26 = vpop.eup %2867 }
 0x396   :  { %1794 = vperm.xlu0 %2755, %v2868_v26   ;;  %v2870_v11 = vpop.eup %2869  ;;  %v704_v0 = vpop.f32.mrf.mxu1 }
 0x398   :  { %v2595_v41 = vpop.f32.mrf.mxu1 }
 0x399   :  { %v2872_v35 = vpop.eup %2871 }
 0x39a   :  { %1804 = vperm.xlu0 %2755, %v2870_v11   ;;  %1799 = vperm.xlu1 %2756, %v2872_v35   ;;  %v2874_v39 = vpop.eup %2873  ;;  %v707_v4 = vpop.f32.mrf.mxu1 }
 0x39b   :  { %v2876_v56 = vpop.eup %2875 }
 0x39c   :  { %v2878_v12 = vpop.eup %2877  ;;  %v2610_v1 = vpop.f32.mrf.mxu1 }
 0x39d   :  { %v2880_v9 = vpop.eup %2879 }
 0x39e   :  { %1401 = vperm.xlu0 %2755, %v2876_v56   ;;  %1197 = vperm.xlu1 %2756, %v2874_v39   ;;  %v2882_v19 = vpop.eup %2881  ;;  %v908_v5 = vpop.f32.mrf.mxu1 }
 0x39f   :  { %v2884_v28 = vpop.eup %2883 }
 0x3a0   :  { %v2886_v17 = vpop.eup %2885  ;;  %v2611_v60 = vpop.f32.mrf.mxu1 }
 0x3a1   :  { %v2888_v16 = vpop.eup %2887 }
 0x3a2   :  { %1809 = vperm.xlu0 %2755, %v2880_v9   ;;  %1605 = vperm.xlu1 %2756, %v2878_v12   ;;  %v911_v7 = vpop.f32.mrf.mxu1 }
 0x3a4   :  { %v2626_v8 = vpop.f32.mrf.mxu1 }
 0x3a6   :  { %369 = vperm.xlu0 %2755, %v2884_v28   ;;  %364 = vperm.xlu1 %2756, %v2882_v19   ;;  %v1112_v23 = vpop.f32.mrf.mxu1 }
 0x3a8   :  { %v3516_v14 = vpop.f32.mrf.mxu1 }
 0x3aa   :  { %374 = vperm.xlu0 %2755, %v2886_v17   ;;  %v1115_v47 = vpop.f32.mrf.mxu1 }
 0x3ac   :  { %v2642_v13 = vpop.f32.mrf.mxu1 }
 0x3ae   :  { %379 = vperm.xlu0 %2755, %v2888_v16   ;;  %v1316_v59 = vpop.f32.mrf.mxu1 }
 0x3b0   :  { %v3518_v63 = vpop.f32.mrf.mxu1 }
 0x3b2   :  { %v1319_v25 = vpop.f32.mrf.mxu1 }
 0x3b4   :  { %v2658_v26 = vpop.f32.mrf.mxu1 }
 0x3b6   :  { %v1520_v12 = vpop.f32.mrf.mxu1 }
 0x3de   :  { %v581_v21 = vpop.permute.xlu0 %580 }
 0x3df   :  { %v590_v57 = vmul.f32 %v2578_v55, %v581_v21  ;;  %v3522_v55 = vpop.f32.mrf.mxu1 }
 0x3e1   :  { %1824 = vrot.lane.b32.xlu0 %v590_v57, %s2947_s18 }
 0x3e2   :  { %v571_v38 = vpop.permute.xlu0 %570  ;;  %v586_v6 = vpop.permute.xlu1 %585 }
 0x3e3   :  { %v588_v30 = vmul.f32 %v571_v38, %v500_v32  ;;  %v591_v34 = vmul.f32 %v2579_v53, %v586_v6 }
 0x3e5   :  { %1820 = vrot.lane.b32.xlu1 %v588_v30, %s2947_s18 }
 0x3e6   :  { %v576_v27 = vpop.permute.xlu1 %575  ;;  %v785_v48 = vpop.permute.xlu0 %784 }
 0x3e7   :  { %v589_v42 = vmul.f32 %v576_v27, %v503_v46  ;;  %v794_v50 = vmul.f32 %v2594_v18, %v785_v48  ;;  %v1523_v46 = vpop.f32.mrf.mxu1  ;;  %v2009_v48 = vld [vmem:[%s3670_s4 + $0x68] sm:$0xff] }
 0x3e9   :  { %1826 = vrot.lane.b32.xlu1 %v591_v34, %s2947_s18  ;;  %1822 = vrot.lane.b32.xlu0 %v589_v42, %s2947_s18  ;;  %v2011_v34 = vld [vmem:[%s3670_s4 + $0x78] sm:$0xff]  ;;  %v2010_v42 = vld [vmem:[%s3670_s4 + $0x70] sm:$0xff] }
 0x3ea   :  { %v775_v44 = vpop.permute.xlu1 %774  ;;  %2041 = vmatprep.subr.mxu1 %v2011_v34 }
 0x3eb   :  { %v792_v10 = vmul.f32 %v775_v44, %v704_v0  ;;  %v2008_v44 = vld [vmem:[%s3670_s4 + $0x60] sm:$0xff]  ;;  %2042 = vmatpush1.msra.mxu1 %v2010_v42 }
 0x3ec   :  { %2043 = vmatprep.subr.mxu1 %v2009_v48 }
 0x3ed   :  { %1836 = vrot.lane.b32.xlu1 %v792_v10, %s2948_s19  ;;  %1840 = vrot.lane.b32.xlu0 %v794_v50, %s2948_s19  ;;  %v2007_v10 = vld [vmem:[%s3670_s4 + $0x58] sm:$0xff] }
 0x3ee   :  { %v989_v36 = vpop.permute.xlu0 %988  ;;  %v790_v33 = vpop.permute.xlu1 %789  ;;  %2044 = vmatpush1.msra.mxu1 %v2008_v44 }
 0x3ef   :  { %v998_v3 = vmul.f32 %v2610_v1, %v989_v36  ;;  %v795_v2 = vmul.f32 %v2595_v41, %v790_v33  ;;  %v2006_v36 = vld [vmem:[%s3670_s4 + $0x50] sm:$0xff]  ;;  %2045 = vmatprep.subr.mxu1 %v2007_v10 }
 0x3f0   :  { %2046 = vmatpush1.msra.mxu1 %v2006_v36  ;;  %v2445_v36 = vld [vmem:[%s3671_s3] ss:$0 sm:$0xff] }
 0x3f1   :  { %1842 = vrot.lane.b32.xlu1 %v795_v2, %s2948_s19  ;;  %1856 = vrot.lane.b32.xlu0 %v998_v3, %s2949_s20 }
 0x3f2   :  { %v780_v40 = vpop.permute.xlu1 %779 }
 0x3f3   :  { %v793_v24 = vmul.f32 %v780_v40, %v707_v4  ;;  %v2674_v4 = vpop.f32.mrf.mxu1 }
 0x3f5   :  { %1838 = vrot.lane.b32.xlu1 %v793_v24, %s2948_s19 }
 0x3f6   :  { %v1193_v43 = vpop.permute.xlu0 %1192  ;;  %v979_v22 = vpop.permute.xlu1 %978 }
 0x3f7   :  { %v996_v15 = vmul.f32 %v979_v22, %v908_v5  ;;  %v1202_v39 = vmul.f32 %v2626_v8, %v1193_v43  ;;  %v1724_v8 = vpop.f32.mrf.mxu1  ;;  %v2005_v43 = vld [vmem:[%s3670_s4 + $0x48] sm:$0xff]  ;;  %v2004_v22 = vld [vmem:[%s3670_s4 + $0x40] sm:$0xff] }
 0x3f8   :  { %2047 = vmatprep.subr.mxu1 %v2005_v43 }
 0x3f9   :  { %1852 = vrot.lane.b32.xlu0 %v996_v15, %s2949_s20  ;;  %v2675_v6 = vpop.f32.mrf.mxu1  ;;  %2048 = vmatpush1.msra.mxu1 %v2004_v22 }
 0x3fa   :  { %v1183_v11 = vpop.permute.xlu0 %1182  ;;  %v994_v35 = vpop.permute.xlu1 %993 }
 0x3fb   :  { %v999_v56 = vmul.f32 %v2611_v60, %v994_v35  ;;  %v1200_v32 = vmul.f32 %v1183_v11, %v1112_v23  ;;  %v1727_v50 = vpop.f32.mrf.mxu1  ;;  %v2954_v11 = vmov 0.0  }
 0x3fc   :  { %2089 = vmatprep.mubr.f32.mxu1 %v2954_v11 }
 0x3fd   :  { %1858 = vrot.lane.b32.xlu1 %v999_v56, %s2949_s20  ;;  %1872 = vrot.lane.b32.xlu0 %v1202_v39, %s2950_s21  ;;  %v2000_v39 = vld [vmem:[%s3670_s4 + $0x20] sm:$0xff]  ;;  %v1999_v56 = vld [vmem:[%s3670_s4 + $0x18] sm:$0xff] }
 0x3fe   :  { %v1397_v9 = vpop.permute.xlu0 %1396  ;;  %v984_v19 = vpop.permute.xlu1 %983 }
 0x3ff   :  { %v1406_v28 = vmul.f32 %v2642_v13, %v1397_v9  ;;  %v997_v17 = vmul.f32 %v984_v19, %v911_v7  ;;  %v1997_v9 = vld [vmem:[%s3670_s4 + $0x8] sm:$0xff]  ;;  %v1996_v19 = vld [vmem:[%s3670_s4] sm:$0xff] }
 0x401   :  { %1854 = vrot.lane.b32.xlu1 %v997_v17, %s2949_s20  ;;  %1888 = vrot.lane.b32.xlu0 %v1406_v28, %s2951_s22 }
 0x402   :  { %v1387_v16 = vpop.permute.xlu0 %1386  ;;  %v1188_v53 = vpop.permute.xlu1 %1187 }
 0x403   :  { %v1201_v0 = vmul.f32 %v1188_v53, %v1115_v47  ;;  %v1404_v5 = vmul.f32 %v1387_v16, %v1316_v59 }
 0x405   :  { %1868 = vrot.lane.b32.xlu1 %v1200_v32, %s2950_s21 }
 0x406   :  { %v1601_v18 = vpop.permute.xlu0 %1600  ;;  %v1392_v7 = vpop.permute.xlu1 %1391 }
 0x407   :  { %v1610_v41 = vmul.f32 %v2658_v26, %v1601_v18  ;;  %v1405_v23 = vmul.f32 %v1392_v7, %v1319_v25  ;;  %v2001_v26 = vld [vmem:[%s3670_s4 + $0x28] sm:$0xff] }
 0x409   :  { %1870 = vrot.lane.b32.xlu1 %v1201_v0, %s2950_s21  ;;  %1904 = vrot.lane.b32.xlu0 %v1610_v41, %s2952_s23 }
 0x40a   :  { %v1591_v1 = vpop.permute.xlu0 %1590 }
 0x40b   :  { %v1608_v60 = vmul.f32 %v1591_v1, %v1520_v12  ;;  %v1998_v12 = vld [vmem:[%s3670_s4 + $0x10] sm:$0xff] }
 0x40c   :  { %v1596_v21 = vpop.permute.xlu1 %1595 }
 0x40d   :  { %1884 = vrot.lane.b32.xlu1 %v1404_v5, %s2951_s22  ;;  %1900 = vrot.lane.b32.xlu0 %v1608_v60, %s2952_s23  ;;  %v1609_v30 = vmul.f32 %v1596_v21, %v1523_v46 }
 0x411   :  { %v1795_v57 = vpop.permute.xlu0 %1794  ;;  %1886 = vrot.lane.b32.xlu1 %v1405_v23, %s2951_s22 }
 0x412   :  { %v1812_v38 = vmul.f32 %v1795_v57, %v1724_v8 }
 0x414   :  { %1916 = vrot.lane.b32.xlu0 %v1812_v38, %s2953_s24 }
 0x415   :  { %v1805_v47 = vpop.permute.xlu0 %1804  ;;  %v1800_v27 = vpop.permute.xlu1 %1799  ;;  %1902 = vrot.lane.b32.xlu1 %v1609_v30, %s2952_s23 }
 0x416   :  { %v1814_v13 = vmul.f32 %v2674_v4, %v1805_v47  ;;  %v1813_v59 = vmul.f32 %v1800_v27, %v1727_v50 }
 0x418   :  { %1920 = vrot.lane.b32.xlu0 %v1814_v13, %s2953_s24 }
 0x419   :  { %v1402_v33 = vpop.permute.xlu0 %1401  ;;  %v1198_v3 = vpop.permute.xlu1 %1197  ;;  %1918 = vrot.lane.b32.xlu1 %v1813_v59, %s2953_s24 }
 0x41a   :  { %v1407_v2 = vmul.f32 %v3518_v63, %v1402_v33  ;;  %v1203_v40 = vmul.f32 %v3516_v14, %v1198_v3  ;;  %v2003_v63 = vld [vmem:[%s3670_s4 + $0x38] sm:$0xff]  ;;  %v2002_v14 = vld [vmem:[%s3670_s4 + $0x30] sm:$0xff] }
 0x41b   :  { %2049 = vmatprep.subr.mxu1 %v2003_v63 }
 0x41c   :  { %1890 = vrot.lane.b32.xlu0 %v1407_v2, %s2951_s22  ;;  %2050 = vmatpush1.msra.mxu1 %v2002_v14 }
 0x41d   :  { %v1810_v24 = vpop.permute.xlu0 %1809  ;;  %v1606_v25 = vpop.permute.xlu1 %1605  ;;  %1874 = vrot.lane.b32.xlu1 %v1203_v40, %s2950_s21  ;;  %2051 = vmatprep.subr.mxu1 %v2001_v26 }
 0x41e   :  { %v1815_v15 = vmul.f32 %v2675_v6, %v1810_v24  ;;  %v1611_v35 = vmul.f32 %v3522_v55, %v1606_v25  ;;  %2052 = vmatpush1.msra.mxu1 %v2000_v39 }
 0x41f   :  { %2053 = vmatprep.subr.mxu1 %v1999_v56 }
 0x420   :  { %1922 = vrot.lane.b32.xlu0 %v1815_v15, %s2953_s24  ;;  %2054 = vmatpush1.msra.mxu1 %v1998_v12 }
 0x421   :  { %1906 = vrot.lane.b32.xlu1 %v1611_v35, %s2952_s23  ;;  %2055 = vmatprep.subr.mxu1 %v1997_v9  ;;  %v370_v28 = vpop.permute.xlu0 %369  ;;  %v365_v55 = vpop.permute.xlu1 %364 }
 0x422   :  { %2056 = vmatpush1.msra.mxu1 %v1996_v19  ;;  %v382_v30 = vmul.f32 %v365_v55, %v3509_v31  ;;  %v383_v31 = vmul.f32 %v370_v28, %v3514_v52 }
 0x425   :  { %v375_v17 = vpop.permute.xlu0 %374 }
 0x426   :  { %v384_v44 = vmul.f32 %v3506_v37, %v375_v17 }
 0x429   :  { %v380_v16 = vpop.permute.xlu0 %379 }
 0x42a   :  { %v385_v9 = vmul.f32 %v3512_v51, %v380_v16 }
 0x453   :  { %v1825_v32 = vpop.permute.xlu0 %1824 }
 0x454   :  { %v1931_v59 = vsel %vm1928_vm6, %v384_v44, %v1825_v32 }
 0x457   :  { %v1821_v53 = vpop.permute.xlu1 %1820 }
 0x458   :  { %v1929_v47 = vsel %vm1928_vm6, %v382_v30, %v1821_v53 }
 0x45b   :  { %v1827_v46 = vpop.permute.xlu1 %1826  ;;  %v1823_v18 = vpop.permute.xlu0 %1822 }
 0x45c   :  { %v1930_v37 = vsel %vm1928_vm6, %v383_v31, %v1823_v18  ;;  %v1932_v53 = vsel %vm1928_vm6, %v385_v9, %v1827_v46 }
 0x45f   :  { %v1837_v0 = vpop.permute.xlu1 %1836  ;;  %v1841_v41 = vpop.permute.xlu0 %1840 }
 0x460   :  { %v1933_v27 = vsel %vm39_vm0, %v1929_v47, %v1837_v0  ;;  %v1935_v33 = vsel %vm39_vm0, %v1931_v59, %v1841_v41 }
 0x463   :  { %v1843_v4 = vpop.permute.xlu1 %1842  ;;  %v1857_v1 = vpop.permute.xlu0 %1856 }
 0x464   :  { %v1940_v40 = vsel %vm1937_vm7, %v1935_v33, %v1857_v1  ;;  %v1936_v41 = vsel %vm39_vm0, %v1932_v53, %v1843_v4  ;;  %v2955_v33 = vmov 1  }
 0x465   :  { %2757 = vset.pattern.permute.xlu1 %v2955_v33  ;;  %2758 = vset.pattern.permute.xlu0 %v2955_v33 }
 0x467   :  { %v1839_v5 = vpop.permute.xlu1 %1838 }
 0x468   :  { %v1934_v52 = vsel %vm39_vm0, %v1930_v37, %v1839_v5  ;;  %vm2012_vm0 = vcmask 523264  }
 0x46b   :  { %v1853_v60 = vpop.permute.xlu0 %1852 }
 0x46c   :  { %v1938_v42 = vsel %vm1937_vm7, %v1933_v27, %v1853_v60 }
 0x46f   :  { %v1859_v7 = vpop.permute.xlu1 %1858  ;;  %v1873_v8 = vpop.permute.xlu0 %1872 }
 0x470   :  { %v1944_v25 = vsel %vm227_vm1, %v1940_v40, %v1873_v8  ;;  %v1941_v5 = vsel %vm1937_vm7, %v1936_v41, %v1859_v7 }
 0x473   :  { %v1855_v23 = vpop.permute.xlu1 %1854  ;;  %v1889_v21 = vpop.permute.xlu0 %1888 }
 0x474   :  { %v1939_v63 = vsel %vm1937_vm7, %v1934_v52, %v1855_v23  ;;  %v1949_v15 = vsel %vm1946_vm8, %v1944_v25, %v1889_v21 }
 0x477   :  { %v1869_v57 = vpop.permute.xlu1 %1868 }
 0x478   :  { %v1942_v48 = vsel %vm227_vm1, %v1938_v42, %v1869_v57 }
 0x47b   :  { %v1871_v38 = vpop.permute.xlu1 %1870  ;;  %v1905_v6 = vpop.permute.xlu0 %1904 }
 0x47c   :  { %v1943_v14 = vsel %vm227_vm1, %v1939_v63, %v1871_v38  ;;  %v1954_v26 = vsel %vm1951_vm10, %v1949_v15, %v1905_v6 }
 0x47f   :  { %v1885_v34 = vpop.permute.xlu1 %1884  ;;  %v1901_v13 = vpop.permute.xlu0 %1900 }
 0x480   :  { %v1947_v50 = vsel %vm1946_vm8, %v1942_v48, %v1885_v34 }
 0x481   :  { %v1952_v3 = vsel %vm1951_vm10, %v1947_v50, %v1901_v13 }
 0x483   :  { %v1887_v10 = vpop.permute.xlu1 %1886 }
 0x484   :  { %v1948_v56 = vsel %vm1946_vm8, %v1943_v14, %v1887_v10 }
 0x486   :  { %v1917_v2 = vpop.permute.xlu0 %1916 }
 0x487   :  { %v1957_v24 = vsel %vm1956_vm9, %v1952_v3, %v1917_v2  ;;  %v1903_v22 = vpop.permute.xlu1 %1902 }
 0x488   :  { %v1968_v43 = vadd.f32 %v2445_v36, %v1957_v24  ;;  %v1953_v28 = vsel %vm1951_vm10, %v1948_v56, %v1903_v22 }
 0x48a   :  { %v1976_v35 = vmin.f32 %v1968_v43, 0.0  ;;  %v1921_v39 = vpop.permute.xlu0 %1920  ;;  %vm1972_vm11 = vcmp.gt.f32.partialorder %v1968_v43, 0.0 }
 0x48b   :  { %v1959_v12 = vsel %vm1956_vm9, %v1954_v26, %v1921_v39  ;;  %v1919_v55 = vpop.permute.xlu1 %1918 }
 0x48c   :  { %v1980_v19 = vmul.f32 1.442695, %v1976_v35  ;;  %v1970_v17 = vadd.f32 %v2445_v36, %v1959_v12  ;;  %v1958_v32 = vsel %vm1956_vm9, %v1953_v28, %v1919_v55 }
 0x48d   :  { %v1969_v0 = vadd.f32 %v2445_v36, %v1958_v32 }
 0x48e   :  { %2889 = vpow2.f32 %v1980_v19  ;;  %v1978_v18 = vmin.f32 %v1970_v17, 0.0  ;;  %v1891_v1 = vpop.permute.xlu0 %1890  ;;  %vm1974_vm13 = vcmp.gt.f32.partialorder %v1970_v17, 0.0 }
 0x48f   :  { %v1977_v8 = vmin.f32 %v1969_v0, 0.0  ;;  %v1875_v51 = vpop.permute.xlu1 %1874  ;;  %vm1973_vm12 = vcmp.gt.f32.partialorder %v1969_v0, 0.0 }
 0x490   :  { %v1984_v60 = vmul.f32 1.442695, %v1978_v18  ;;  %v1945_v16 = vsel %vm227_vm1, %v1941_v5, %v1875_v51 }
 0x491   :  { %v1982_v23 = vmul.f32 1.442695, %v1977_v8  ;;  %v1950_v57 = vsel %vm1946_vm8, %v1945_v16, %v1891_v1 }
 0x492   :  { %2891 = vpow2.f32 %v1984_v60  ;;  %v1923_v46 = vpop.permute.xlu0 %1922 }
 0x493   :  { %2893 = vpow2.f32 %v1982_v23  ;;  %v1907_v21 = vpop.permute.xlu1 %1906 }
 0x494   :  { %v1955_v38 = vsel %vm1951_vm10, %v1950_v57, %v1907_v21 }
 0x495   :  { %v1960_v6 = vsel %vm1956_vm9, %v1955_v38, %v1923_v46 }
 0x496   :  { %v1971_v4 = vadd.f32 %v2445_v36, %v1960_v6 }
 0x498   :  { %v1979_v30 = vmin.f32 %v1971_v4, 0.0  ;;  %vm1975_vm14 = vcmp.gt.f32.partialorder %v1971_v4, 0.0 }
 0x49a   :  { %v1986_v7 = vmul.f32 1.442695, %v1979_v30 }
 0x49b   :  { %v2890_v47 = vpop.eup %2889 }
 0x49c   :  { %v2446_v27 = vadd.f32 -1.0, %v2890_v47  ;;  %2895 = vpow2.f32 %v1986_v7 }
 0x49e   :  { %v1992_v34 = vsel %vm1972_vm11, %v1968_v43, %v2446_v27 }
 0x49f   :  { %2450 = vmatmul.mubr.msk.f32.vlgmr.msra.gmra.mxu1 %vm2012_vm0, %v1992_v34  ;;  %v2892_v42 = vpop.eup %2891 }
 0x4a0   :  { %2095 = vmatprep.mubr.f32.mxu1 %v2954_v11  ;;  %v2894_v48 = vpop.eup %2893  ;;  %v2448_v50 = vadd.f32 -1.0, %v2892_v42 }
 0x4a1   :  { %v2447_v13 = vadd.f32 -1.0, %v2894_v48 }
 0x4a2   :  { %v1994_v10 = vsel %vm1974_vm13, %v1970_v17, %v2448_v50 }
 0x4a3   :  { %v1993_v44 = vsel %vm1973_vm12, %v1969_v0, %v2447_v13 }
 0x4a4   :  { %2451 = vmatmul.mubr.msk.f32.gmra.mxu1 %vm2012_vm0, %v1993_v44 }
 0x4a5   :  { %2101 = vmatprep.mubr.f32.mxu1 %v2954_v11 }
 0x4a8   :  { %2452 = vmatmul.mubr.msk.f32.gmra.mxu1 %vm2012_vm0, %v1994_v10 }
 0x4a9   :  { %v2896_v31 = vpop.eup %2895  ;;  %2107 = vmatprep.mubr.f32.mxu1 %v2954_v11 }
 0x4aa   :  { %v2449_v59 = vadd.f32 -1.0, %v2896_v31 }
 0x4ac   :  { %v1995_v36 = vsel %vm1975_vm14, %v1971_v4, %v2449_v59 }
 0x4ad   :  { %2453 = vmatmul.mubr.msk.f32.gmra.mxu1 %vm2012_vm0, %v1995_v36 }
 0x55f   :  { %v2091_v3 = vpop.f32.mrf.mxu1 }
 0x561   :  { %v2093_v2 = vpop.f32.mrf.mxu1 }
 0x562   :  { %2148 = vperm.xlu1 %2757, %v2093_v2  }
 0x564   :  { %v2097_v37 = vpop.f32.mrf.mxu1 }
 0x565   :  { %v2216_v22 = vpack.c.bf16 %v2097_v37, %v2091_v3  ;;  %v2458_v37 = vld [vmem:[%s3672_s5] ss:$0 sm:$0xff] }
 0x566   :  { %v2099_v40 = vpop.f32.mrf.mxu1 }
 0x567   :  { %2153 = vperm.xlu0 %2758, %v2099_v40  }
 0x568   :  { %v2103_v24 = vpop.f32.mrf.mxu1 }
 0x56a   :  { %v2105_v52 = vpop.f32.mrf.mxu1 }
 0x56b   :  { %2158 = vperm.xlu1 %2757, %v2105_v52  }
 0x56d   :  { %v2109_v25 = vpop.f32.mrf.mxu1 }
 0x56e   :  { %v2217_v43 = vpack.c.bf16 %v2109_v25, %v2103_v24 }
 0x56f   :  { %v2111_v11 = vpop.f32.mrf.mxu1 }
 0x570   :  { %2684 = vmatprep.subr.bf16.mxu0 %v2217_v43  ;;  %2163 = vperm.xlu1 %2757, %v2111_v11  }
 0x571   :  { %2685 = vmatpush3.bf16.msra.mxu0 %v2217_v43 }
 0x572   :  { %2686 = vmatprep.subr.bf16.mxu0 %v2216_v22 }
 0x574   :  { %2759 = vset.pattern.permute.xlu1 %v2946_v20 }
 0x575   :  { %2687 = vmatpush3.bf16.msra.mxu0 %v2216_v22 }
 0x576   :  { %2692 = vmatprep.subr.bf16.mxu0 %v2938_v29 }
 0x585   :  { %2114 = vxpose.xlu0.b32.start [1/4] (short) (narrow) %v2093_v2, 8 }
 0x589   :  { %2115 = vxpose.xlu0.b32.cont [2/4] (short) (narrow) %v2099_v40, 8 }
 0x58d   :  { %2116 = vxpose.xlu0.b32.cont [3/4] (short) (narrow) %v2105_v52, 8 }
 0x591   :  { %2117 = vxpose.xlu0.b32.end [4/4] (short) (narrow) %v2111_v11, 8 }
 0x5ba   :  { %2760 = vset.pattern.permute.xlu0 %v2946_v20 }
 0x5dd   :  { %v2149_v63 = vpop.permute.xlu1 %2148 }
 0x5e2   :  { %v2154_v15 = vpop.permute.xlu0 %2153 }
 0x5e6   :  { %v2159_v14 = vpop.permute.xlu1 %2158 }
 0x5eb   :  { %v2164_v39 = vpop.permute.xlu1 %2163 }
 0x601   :  { %v2130_v26 = vpop.trf.xlu0 }
 0x602   :  { %v2169_v35 = vrot.slane %v2130_v26, %v205_v49 }
 0x604   :  { %v2170_v56 = vadd.f32 %v2169_v35, %v2149_v63  ;;  %v2171_v12 = vadd.f32 %v2169_v35, %v2154_v15  ;;  %v2172_v9 = vadd.f32 %v2169_v35, %v2159_v14  ;;  %v2173_v19 = vadd.f32 %v2169_v35, %v2164_v39 }
 0x606   :  { %vm2174_vm15 = vcmp.gt.f32.partialorder %v2170_v56, 0.0  ;;  %v2178_v28 = vmul.f32 0.2, %v2170_v56  ;;  %vm2177_vm2 = vcmp.gt.f32.partialorder %v2173_v19, 0.0  ;;  %v2181_v17 = vmul.f32 0.2, %v2173_v19 }
 0x607   :  { %vm2175_vm3 = vcmp.gt.f32.partialorder %v2171_v12, 0.0  ;;  %v2179_v55 = vmul.f32 0.2, %v2171_v12  ;;  %v2180_v53 = vmul.f32 0.2, %v2172_v9  ;;  %vm2176_vm4 = vcmp.gt.f32.partialorder %v2172_v9, 0.0 }
 0x608   :  { %v2182_v32 = vsel %vm2174_vm15, %v2170_v56, %v2178_v28  ;;  %v2185_v20 = vsel %vm2177_vm2, %v2173_v19, %v2181_v17 }
 0x609   :  { %v2186_v18 = vadd.f32 %v3114_v58, %v2182_v32  ;;  %v2189_v0 = vadd.f32 %v3120_v61, %v2185_v20  ;;  %v2183_v45 = vsel %vm2175_vm3, %v2171_v12, %v2179_v55  ;;  %v2184_v5 = vsel %vm2176_vm4, %v2172_v9, %v2180_v53 }
 0x60a   :  { %v2187_v1 = vadd.f32 %v3106_v54, %v2183_v45  ;;  %v2188_v8 = vadd.f32 %v3122_v62, %v2184_v5 }
 0x60b   :  { %v2190_v49 = vsel %vm227_vm1, %v2186_v18, -inf  ;;  %v2199_v41 = vsel %vm227_vm1, %v2189_v0, -inf }
 0x60c   :  { %2191 = vmax.xlane.f32.xlu1 %v2190_v49  ;;  %2200 = vmax.xlane.f32.xlu0 %v2199_v41  ;;  %v2193_v60 = vsel %vm227_vm1, %v2187_v1, -inf  ;;  %v2196_v58 = vsel %vm227_vm1, %v2188_v8, -inf }
 0x610   :  { %2194 = vmax.xlane.f32.xlu1 %v2193_v60 }
 0x614   :  { %2197 = vmax.xlane.f32.xlu1 %v2196_v58 }
 0x695   :  { %v2192_v61 = vpop.xlane.xlu1 %2191  ;;  %v2201_v51 = vpop.xlane.xlu0 %2200 }
 0x696   :  { %v2202_v16 = vsub.f32 %v2186_v18, %v2192_v61  ;;  %v2205_v23 = vsub.f32 %v2189_v0, %v2201_v51 }
 0x698   :  { %v2206_v21 = vmul.f32 1.442695, %v2202_v16  ;;  %v2212_v54 = vmul.f32 1.442695, %v2205_v23 }
 0x699   :  { %v2195_v57 = vpop.xlane.xlu1 %2194 }
 0x69a   :  { %v2203_v46 = vsub.f32 %v2187_v1, %v2195_v57  ;;  %2897 = vpow2.f32 %v2206_v21 }
 0x69c   :  { %v2208_v38 = vmul.f32 1.442695, %v2203_v46 }
 0x69d   :  { %v2198_v6 = vpop.xlane.xlu1 %2197 }
 0x69e   :  { %2899 = vpow2.f32 %v2208_v38  ;;  %v2204_v4 = vsub.f32 %v2188_v8, %v2198_v6 }
 0x69f   :  { %2901 = vpow2.f32 %v2212_v54 }
 0x6a0   :  { %v2210_v30 = vmul.f32 1.442695, %v2204_v4 }
 0x6a2   :  { %2903 = vpow2.f32 %v2210_v30 }
 0x6a7   :  { %v2898_v62 = vpop.eup %2897 }
 0x6ab   :  { %v2900_v47 = vpop.eup %2899 }
 0x6ac   :  { %v2214_v7 = vpack.c.bf16 %v2900_v47, %v2898_v62  ;;  %v2902_v27 = vpop.eup %2901 }
 0x6ae   :  { %2688 = vmatprep.mubr.msk.bf16.mxu0 %vm227_vm1, %v2214_v7 }
 0x6af   :  { %v2904_v34 = vpop.eup %2903 }
 0x6b0   :  { %v2215_v42 = vpack.c.bf16 %v2902_v27, %v2904_v34 }
 0x6b2   :  { %2689 = vmatmul.mubr.msk.bf16.vlgmr.msra.gmra.mxu0 %vm227_vm1, %v2215_v42 }
 0x6b3   :  { %2693 = vmatpush3.bf16.msra.mxu0 %v2938_v29  ;;  %2696 = vmatprep.mubr.msk.bf16.mxu0 %vm227_vm1, %v2214_v7 }
 0x6b4   :  { %2694 = vmatprep.subr.bf16.mxu0 %v2938_v29 }
 0x6b7   :  { %2695 = vmatpush3.bf16.msra.mxu0 %v2938_v29 }
 0x6ba   :  { %2697 = vmatmul.mubr.msk.bf16.vlgmr.msra.gmra.mxu0 %vm227_vm1, %v2215_v42 }
 0x772   :  { %v2690_v48 = vpop.f32.mrf.mxu0 }
 0x774   :  { %v2258_v13 = vpop.f32.mrf.mxu0 }
 0x776   :  { %v2691_v44 = vpop.f32.mrf.mxu0 }
 0x778   :  { %v2261_v50 = vpop.f32.mrf.mxu0 }
 0x77a   :  { %v2698_v10 = vpop.f32.mrf.mxu0 }
 0x77b   :  { %2905 = vrcp.f32 %v2698_v10 }
 0x77c   :  { %v2307_v31 = vpop.f32.mrf.mxu0 }
 0x77d   :  { %2907 = vrcp.f32 %v2307_v31 }
 0x77e   :  { %v2699_v59 = vpop.f32.mrf.mxu0 }
 0x780   :  { %v2310_v36 = vpop.f32.mrf.mxu0 }
 0x781   :  { %2909 = vrcp.f32 %v2310_v36 }
 0x782   :  { %2911 = vrcp.f32 %v2699_v59 }
 0x788   :  { %v2906_v33 = vpop.eup %2905 }
 0x789   :  { %2338 = vperm.xlu1 %2759, %v2906_v33  }
 0x78a   :  { %v2908_v3 = vpop.eup %2907 }
 0x78d   :  { %2328 = vperm.xlu1 %2759, %v2908_v3  }
 0x78e   :  { %v2910_v2 = vpop.eup %2909 }
 0x78f   :  { %v2912_v29 = vpop.eup %2911 }
 0x791   :  { %2333 = vperm.xlu1 %2759, %v2910_v2  }
 0x795   :  { %2343 = vperm.xlu1 %2759, %v2912_v29  }
 0x804   :  { %v2339_v40 = vpop.permute.xlu1 %2338 }
 0x805   :  { %v2348_v24 = vmul.f32 %v2690_v48, %v2339_v40 }
 0x807   :  { %v2359_v52 = vadd.f32 %v2458_v37, %v2348_v24 }
 0x808   :  { %v2329_v25 = vpop.permute.xlu1 %2328 }
 0x809   :  { %v2346_v43 = vmul.f32 %v2329_v25, %v2258_v13  ;;  %2365 = vmax.xlane.f32.xlu0 %v2359_v52 }
 0x80b   :  { %v2357_v11 = vadd.f32 %v2458_v37, %v2346_v43 }
 0x80c   :  { %v2334_v22 = vpop.permute.xlu1 %2333 }
 0x80d   :  { %v2347_v63 = vmul.f32 %v2334_v22, %v2261_v50  ;;  %2361 = vmax.xlane.f32.xlu1 %v2357_v11 }
 0x80f   :  { %v2358_v15 = vadd.f32 %v2458_v37, %v2347_v63 }
 0x810   :  { %v2344_v14 = vpop.permute.xlu1 %2343 }
 0x811   :  { %v2349_v26 = vmul.f32 %v2691_v44, %v2344_v14  ;;  %2363 = vmax.xlane.f32.xlu0 %v2358_v15 }
 0x813   :  { %v2360_v35 = vadd.f32 %v2458_v37, %v2349_v26 }
 0x815   :  { %2367 = vmax.xlane.f32.xlu0 %v2360_v35 }
 0x892   :  { %v2366_v39 = vpop.xlane.xlu0 %2365 }
 0x893   :  { %v2371_v19 = vsub.f32 %v2359_v52, %v2366_v39 }
 0x895   :  { %v2377_v32 = vmul.f32 1.442695, %v2371_v19 }
 0x896   :  { %v2362_v56 = vpop.xlane.xlu1 %2361 }
 0x897   :  { %v2369_v12 = vsub.f32 %v2357_v11, %v2362_v56 }
 0x899   :  { %v2373_v9 = vmul.f32 1.442695, %v2369_v12 }
 0x89a   :  { %v2364_v28 = vpop.xlane.xlu0 %2363 }
 0x89b   :  { %2913 = vpow2.f32 %v2373_v9  ;;  %v2370_v17 = vsub.f32 %v2358_v15, %v2364_v28 }
 0x89d   :  { %v2375_v55 = vmul.f32 1.442695, %v2370_v17 }
 0x89e   :  { %v2368_v20 = vpop.xlane.xlu0 %2367 }
 0x89f   :  { %2915 = vpow2.f32 %v2375_v55  ;;  %v2372_v53 = vsub.f32 %v2360_v35, %v2368_v20 }
 0x8a0   :  { %2917 = vpow2.f32 %v2377_v32 }
 0x8a1   :  { %v2379_v18 = vmul.f32 1.442695, %v2372_v53 }
 0x8a3   :  { %2919 = vpow2.f32 %v2379_v18 }
 0x8a8   :  { %v2914_v0 = vpop.eup %2913 }
 0x8a9   :  { %2381 = vadd.xlane.f32.xlu0 %v2914_v0 }
 0x8ac   :  { %v2916_v45 = vpop.eup %2915 }
 0x8ad   :  { %2383 = vadd.xlane.f32.xlu0 %v2916_v45  ;;  %v2918_v49 = vpop.eup %2917 }
 0x8b0   :  { %v2920_v41 = vpop.eup %2919 }
 0x8b1   :  { %2387 = vadd.xlane.f32.xlu1 %v2920_v41  ;;  %2385 = vadd.xlane.f32.xlu0 %v2918_v49 }
 0x932   :  { %v2382_v1 = vpop.xlane.xlu0 %2381 }
 0x933   :  { %2921 = vlog2.f32 %v2382_v1 }
 0x936   :  { %v2384_v5 = vpop.xlane.xlu0 %2383 }
 0x937   :  { %2923 = vlog2.f32 %v2384_v5 }
 0x93a   :  { %v2386_v60 = vpop.xlane.xlu0 %2385  ;;  %v2388_v8 = vpop.xlane.xlu1 %2387 }
 0x93b   :  { %2925 = vlog2.f32 %v2386_v60 }
 0x93c   :  { %2927 = vlog2.f32 %v2388_v8 }
 0x940   :  { %v2922_v58 = vpop.eup %2921 }
 0x941   :  { %v2390_v61 = vmul.f32 0.6931472, %v2922_v58 }
 0x943   :  { %v2397_v51 = vsub.f32 %v2369_v12, %v2390_v61 }
 0x944   :  { %v2924_v16 = vpop.eup %2923 }
 0x945   :  { %2401 = vst [vmem:[%s3673_s6] sm:$0xff] %v2397_v51  ;;  %v2392_v23 = vmul.f32 0.6931472, %v2924_v16 }
 0x947   :  { %v2398_v21 = vsub.f32 %v2370_v17, %v2392_v23 }
 0x948   :  { %v2926_v57 = vpop.eup %2925 }
 0x949   :  { %v2928_v46 = vpop.eup %2927  ;;  %2402 = vst [vmem:[%s3673_s6 + $0x8] sm:$0xff] %v2398_v21  ;;  %v2394_v38 = vmul.f32 0.6931472, %v2926_v57 }
 0x94a   :  { %v2396_v54 = vmul.f32 0.6931472, %v2928_v46 }
 0x94b   :  { %v2399_v6 = vsub.f32 %v2371_v19, %v2394_v38 }
 0x94c   :  { %v2400_v4 = vsub.f32 %v2372_v53, %v2396_v54 }
 0x94d   :  { %2403 = vst [vmem:[%s3673_s6 + $0x10] sm:$0xff] %v2399_v6 }
 0x94e   :  { %2404 = vst [vmem:[%s3673_s6 + $0x18] sm:$0xff] %v2400_v4 }

</bundles_post_ra>
